<compile_context>
chip_gen: v7x
topology: tpu7x:2x2x1
jax: 0.10.0
libtpu: 0.0.40
codegen_flags: <defaults>
</compile_context>

<pallas_src>
import functools

import jax
import jax.numpy as jnp
from jax.experimental import pallas as pl
from jax.experimental.pallas import tpu as pltpu

# Fuse the K taps into the MXU contraction while K*C fits in two 128-row
# systolic passes; above that, use one matmul per tap.
_FUSE_TAP_ROW_LIMIT = 256


def _temporal_block_kernel(x_ref, w1_ref, b1_ref, w2_ref, b2_ref, *rest,
                           batch_block, kernel_size, dilation, padding,
                           pad_lanes, has_downsample):
    # Per grid step (bf16 unless noted):
    #   x_ref  : (batch_block, C_in,  L)
    #   w1_ref : (C_out, K*C_in)      b1_ref: (C_out, 1) f32
    #   w2_ref : (C_out, K*C_out)     b2_ref: (C_out, 1) f32
    #   wd_ref : (C_out, C_in)        bd_ref: (C_out, 1) f32   (downsample only)
    #   out_ref: (batch_block, C_out, L)
    #   pad_s  : (Cmax, batch_block*(pad_lanes+L)) bf16 VMEM scratch, reused for
    #            both padded activations (xpad, then h1pad).
    if has_downsample:
        wd_ref, bd_ref, out_ref, pad_s = rest
    else:
        out_ref, pad_s = rest

    K, d, P, Ppad = kernel_size, dilation, padding, pad_lanes
    C_in, L = x_ref.shape[1], x_ref.shape[2]
    C_out = out_ref.shape[1]
    seg = Ppad + L                      # per-segment lane stride (128-aligned)
    n_tot = batch_block * seg           # total scratch lanes
    n_out = n_tot - Ppad                # lanes covered by each conv matmul
    base = Ppad - P                     # tap-0 read offset (>= 0 since Ppad >= P)

    def fill_padded(c_rows, segment_data):
        # Per-segment causal left pad: zeros in [b*seg, b*seg+Ppad), data in
        # [b*seg+Ppad, b*seg+Ppad+L).  Data stores are lane-aligned; re-zeroing
        # every step is required (per-core scratch under "parallel" sharding).
        for b in range(batch_block):
            if Ppad > 0:
                pad_s[:c_rows, b * seg: b * seg + Ppad] = jnp.zeros(
                    (c_rows, Ppad), pad_s.dtype)
            pad_s[:c_rows, b * seg + Ppad: b * seg + Ppad + L] = segment_data(b)

    def causal_conv(c_rows, w_ref):
        # y[:, j] = sum_k W_k @ pad_s[:c_rows, Ppad + j - P + k*d];
        # segment b is valid at y lanes [b*seg, b*seg + L).
        if K * c_rows <= _FUSE_TAP_ROW_LIMIT:
            if K == 1:
                stacked = pad_s[:c_rows, base: base + n_out]
            else:
                # Concatenate the K shifted slices along the contraction rows.
                # Concat is done at f32 row granularity (one sublane tile per
                # 8-row slice) and repacked to bf16 right before the MXU; the
                # bf16->f32->bf16 round trip is exact.
                parts = [pad_s[:c_rows, base + k * d: base + k * d + n_out]
                         .astype(jnp.float32) for k in range(K)]
                stacked = jnp.concatenate(parts, axis=0).astype(pad_s.dtype)
            return jnp.dot(w_ref[...], stacked,
                           preferred_element_type=jnp.float32)
        # Large-channel fallback: one matmul per tap; accumulator initialized
        # by tap 0 (no zeros materialization).
        acc = jnp.dot(w_ref[:, :c_rows], pad_s[:c_rows, base: base + n_out],
                      preferred_element_type=jnp.float32)
        for k in range(1, K):
            acc = acc + jnp.dot(
                w_ref[:, k * c_rows: (k + 1) * c_rows],
                pad_s[:c_rows, base + k * d: base + k * d + n_out],
                preferred_element_type=jnp.float32)
        return acc

    # ---- conv1 (weight_norm already folded) + bias + ReLU (f32) --------------
    fill_padded(C_in, lambda b: x_ref[b])
    h1 = jnp.maximum(causal_conv(C_in, w1_ref) + b1_ref[...], 0.0)
    # TODO(synk): dropout is identity here (inference); no RNG masking.

    # ---- conv2: reuse the same scratch for the padded intermediate -----------
    fill_padded(C_out, lambda b: h1[:, b * seg: b * seg + L].astype(pad_s.dtype))
    h2 = jnp.maximum(causal_conv(C_out, w2_ref) + b2_ref[...], 0.0)

    # ---- residual (1x1 conv or identity) + final ReLU, per segment -----------
    for b in range(batch_block):
        xb = x_ref[b]                                     # (C_in, L) bf16
        if has_downsample:
            res = jnp.dot(wd_ref[...], xb,
                          preferred_element_type=jnp.float32) + bd_ref[...]
        else:
            res = xb.astype(jnp.float32)
        out_ref[b] = jnp.maximum(h2[:, b * seg: b * seg + L] + res,
                                 0.0).astype(out_ref.dtype)


def temporal_block_forward(x, w1, b1, w2, b2, wd=None, bd=None, *,
                           kernel_size, stride, dilation, padding,
                           batch_block=None, out_dtype=None):
    """x: (B, C_in, L); w1: (C_out, C_in, K); w2: (C_out, C_out, K); wd: (C_out, C_in)."""
    assert stride == 1, "TemporalBlock residual add requires stride == 1"
    B, C_in, L = x.shape
    C_out, _, K = w1.shape
    assert K == kernel_size
    P = padding
    assert P == (K - 1) * dilation, "causal TCN requires padding == (K-1)*dilation"
    has_downsample = wd is not None
    assert has_downsample or (C_in == C_out)
    if out_dtype is None:
        out_dtype = jnp.float32        # use jnp.bfloat16 if the model runs in bf16

    # Batch packing: amortize per-grid-step overhead and fatten the MXU N dim,
    # while keeping >= 2 grid steps so both v7x TensorCores stay busy.
    if batch_block is None:
        batch_block = 1
        for cand in (8, 4, 2):
            if B % cand == 0 and B // cand >= 2:
                batch_block = cand
                break
    assert B % batch_block == 0

    pad_lanes = 0 if P == 0 else pl.cdiv(P, 128) * 128    # lane-aligned left pad
    seg = pad_lanes + L
    c_max = pl.cdiv(max(C_in, C_out), 8) * 8

    # bf16 MXU operands (full-rate MXU, half the DMA bytes); f32 accumulation.
    cdt = jnp.bfloat16
    # Tap-fused weight layout: column (k*C_in + i) multiplies channel i, tap k.
    w1_f = jnp.transpose(w1, (0, 2, 1)).reshape(C_out, K * C_in).astype(cdt)
    w2_f = jnp.transpose(w2, (0, 2, 1)).reshape(C_out, K * C_out).astype(cdt)
    b1_c = b1.reshape(C_out, 1).astype(jnp.float32)
    b2_c = b2.reshape(C_out, 1).astype(jnp.float32)
    x_c = x.astype(cdt)                 # no-op if the caller already holds bf16

    kern = functools.partial(
        _temporal_block_kernel,
        batch_block=batch_block, kernel_size=K, dilation=dilation,
        padding=P, pad_lanes=pad_lanes, has_downsample=has_downsample)

    args = [x_c, w1_f, b1_c, w2_f, b2_c]
    if has_downsample:
        args += [wd.astype(cdt), bd.reshape(C_out, 1).astype(jnp.float32)]

    def make_call(weight_mode):
        wkw = {} if weight_mode is None else {"pipeline_mode": weight_mode}
        in_specs = [
            pl.BlockSpec((batch_block, C_in, L), lambda g: (g, 0, 0)),    # x
            pl.BlockSpec((C_out, K * C_in), lambda g: (0, 0), **wkw),     # w1
            pl.BlockSpec((C_out, 1), lambda g: (0, 0)),                   # b1
            pl.BlockSpec((C_out, K * C_out), lambda g: (0, 0), **wkw),    # w2
            pl.BlockSpec((C_out, 1), lambda g: (0, 0)),                   # b2
        ]
        if has_downsample:
            in_specs += [pl.BlockSpec((C_out, C_in), lambda g: (0, 0), **wkw),
                         pl.BlockSpec((C_out, 1), lambda g: (0, 0))]
        return pl.pallas_call(
            kern,
            out_shape=jax.ShapeDtypeStruct((B, C_out, L), out_dtype),
            grid_spec=pltpu.PrefetchScalarGridSpec(
                num_scalar_prefetch=0,
                grid=(B // batch_block,),
                in_specs=in_specs,
                out_specs=pl.BlockSpec((batch_block, C_out, L),
                                       lambda g: (g, 0, 0)),
                scratch_shapes=[pltpu.VMEM((c_max, batch_block * seg), cdt)]),
            compiler_params=pltpu.CompilerParams(
                dimension_semantics=("parallel",),
                vmem_limit_bytes=48 * 1024 * 1024))

    # Grid-invariant weights only need one VMEM buffer; degrade gracefully to
    # the default double-buffered pipeline if pipeline_mode isn't supported.
    try:
        return make_call(pl.Buffered(1))(*args)
    except Exception:
        return make_call(None)(*args)


def reference_forward(x, w1, b1, w2, b2, wd, bd, *, dilation, padding,
                      compute_dtype=jnp.bfloat16):
    """Pure-JAX reference mimicking the kernel numerics (bf16 operands and
    bf16 inter-conv activation, f32 accumulation / elementwise)."""
    def causal_conv(h, w, b):
        y = jax.lax.conv_general_dilated(
            h.astype(compute_dtype), w.astype(compute_dtype),
            window_strides=(1,), padding=[(padding, 0)],
            rhs_dilation=(dilation,), dimension_numbers=("NCH", "OIH", "NCH"),
            preferred_element_type=jnp.float32)
        return y + b[None, :, None].astype(jnp.float32)

    h1 = jax.nn.relu(causal_conv(x, w1, b1))
    h2 = jax.nn.relu(causal_conv(h1, w2, b2))
    if wd is None:
        res = x.astype(compute_dtype).astype(jnp.float32)
    else:
        res = jnp.einsum("oi,bil->bol", wd.astype(compute_dtype),
                         x.astype(compute_dtype),
                         preferred_element_type=jnp.float32)
        res = res + bd[None, :, None].astype(jnp.float32)
    return jax.nn.relu(h2 + res)


if __name__ == "__main__":
    key = jax.random.PRNGKey(0)
    ks = jax.random.split(key, 9)

    # Small, layout-friendly shapes: L multiple of 128 (lane-dense unmasked
    # stores), channels multiples of 8 (sublanes), B=4 so two batch elements
    # pack per grid step and the grid still has two "parallel" steps.
    B, C_in, C_out, L = 4, 8, 16, 256
    K, stride, dilation = 3, 1, 2
    padding = (K - 1) * dilation          # causal padding, preserves length

    # weight_norm (v, g) -> effective weight w = g * v / ||v|| per out channel.
    def wn_effective(vkey, gkey, shape):
        v = 0.01 * jax.random.normal(vkey, shape, dtype=jnp.float32)
        g = jax.random.uniform(gkey, (shape[0],), minval=0.5, maxval=1.5,
                               dtype=jnp.float32)
        norm = jnp.sqrt(jnp.sum(v * v, axis=tuple(range(1, v.ndim)),
                                keepdims=True))
        return g.reshape((-1,) + (1,) * (v.ndim - 1)) * v / norm

    w1 = wn_effective(ks[0], ks[1], (C_out, C_in, K))
    w2 = wn_effective(ks[2], ks[3], (C_out, C_out, K))
    b1 = 0.01 * jax.random.normal(ks[4], (C_out,), dtype=jnp.float32)
    b2 = 0.01 * jax.random.normal(ks[5], (C_out,), dtype=jnp.float32)
    wd = 0.01 * jax.random.normal(ks[6], (C_out, C_in), dtype=jnp.float32)
    bd = 0.01 * jax.random.normal(ks[7], (C_out,), dtype=jnp.float32)
    x = jax.random.normal(ks[8], (B, C_in, L), dtype=jnp.float32)

    out = temporal_block_forward(x, w1, b1, w2, b2, wd, bd,
                                 kernel_size=K, stride=stride,
                                 dilation=dilation, padding=padding)
    out = jax.block_until_ready(out)

    ref = reference_forward(x, w1, b1, w2, b2, wd, bd,
                            dilation=dilation, padding=padding)
    assert out.shape == (B, C_out, L)
    out32 = out.astype(jnp.float32)
    err = float(jnp.max(jnp.abs(out32 - ref)))
    assert jnp.allclose(out32, ref, atol=1e-2, rtol=1e-2), err

    print("KERNEL_OK")
</pallas_src>

<mosaic_0001>
module attributes {stable_mosaic.version = 11 : i64} {
  func.func @_temporal_block_kernel(%arg0: i32, %arg1: memref<2x8x256xbf16, #tpu.memory_space<vmem>>, %arg2: memref<16x24xbf16, #tpu.memory_space<vmem>>, %arg3: memref<16x1xf32, #tpu.memory_space<vmem>>, %arg4: memref<16x48xbf16, #tpu.memory_space<vmem>>, %arg5: memref<16x1xf32, #tpu.memory_space<vmem>>, %arg6: memref<16x8xbf16, #tpu.memory_space<vmem>>, %arg7: memref<16x1xf32, #tpu.memory_space<vmem>>, %arg8: memref<2x16x256xf32, #tpu.memory_space<vmem>>, %arg9: memref<16x768xbf16, #tpu.memory_space<vmem>>) attributes {dimension_semantics = [#tpu.dimension_semantics<parallel>], iteration_bounds = array<i64: 2>, scalar_prefetch = 0 : i64, scratch_operands = 1 : i64, tpu.core_type = #tpu.core_type<tc>, window_params = [{transform_indices = @transform_0, window_bounds = array<i64: 2, 8, 256>}, {pipeline_mode = #tpu.pipeline_mode<synchronous>, transform_indices = @transform_1, window_bounds = array<i64: 16, 24>}, {pipeline_mode = #tpu.pipeline_mode<synchronous>, transform_indices = @transform_2, window_bounds = array<i64: 16, 1>}, {pipeline_mode = #tpu.pipeline_mode<synchronous>, transform_indices = @transform_3, window_bounds = array<i64: 16, 48>}, {pipeline_mode = #tpu.pipeline_mode<synchronous>, transform_indices = @transform_4, window_bounds = array<i64: 16, 1>}, {pipeline_mode = #tpu.pipeline_mode<synchronous>, transform_indices = @transform_5, window_bounds = array<i64: 16, 8>}, {pipeline_mode = #tpu.pipeline_mode<synchronous>, transform_indices = @transform_6, window_bounds = array<i64: 16, 1>}, {transform_indices = @transform_7, window_bounds = array<i64: 2, 16, 256>}]} {
    %cst = arith.constant 0.000000e+00 : bf16
    %0 = vector.broadcast %cst : bf16 to vector<8x128xbf16>
    %c0 = arith.constant 0 : index
    %c0_0 = arith.constant 0 : index
    %1 = vector.load %arg9[%c0, %c0_0] : memref<16x768xbf16, #tpu.memory_space<vmem>>, vector<8x128xbf16>
    tpu.vector_store %arg9[%c0, %c0_0], %0 {strides = array<i32>} : memref<16x768xbf16, #tpu.memory_space<vmem>>, vector<8x128xbf16>,
    %c0_1 = arith.constant 0 : index
    %c0_2 = arith.constant 0 : index
    %c0_3 = arith.constant 0 : index
    %2 = vector.load %arg1[%c0_1, %c0_2, %c0_3] : memref<2x8x256xbf16, #tpu.memory_space<vmem>>, vector<1x8x256xbf16>
    %3 = vector.shape_cast %2 : vector<1x8x256xbf16> to vector<8x256xbf16>
    %c0_4 = arith.constant 0 : index
    %c128 = arith.constant 128 : index
    %4 = vector.load %arg9[%c0_4, %c128] : memref<16x768xbf16, #tpu.memory_space<vmem>>, vector<8x256xbf16>
    tpu.vector_store %arg9[%c0_4, %c128], %3 {strides = array<i32>} : memref<16x768xbf16, #tpu.memory_space<vmem>>, vector<8x256xbf16>,
    %cst_5 = arith.constant 0.000000e+00 : bf16
    %5 = vector.broadcast %cst_5 : bf16 to vector<8x128xbf16>
    %c0_6 = arith.constant 0 : index
    %c384 = arith.constant 384 : index
    %6 = vector.load %arg9[%c0_6, %c384] : memref<16x768xbf16, #tpu.memory_space<vmem>>, vector<8x128xbf16>
    tpu.vector_store %arg9[%c0_6, %c384], %5 {strides = array<i32>} : memref<16x768xbf16, #tpu.memory_space<vmem>>, vector<8x128xbf16>,
    %c1 = arith.constant 1 : index
    %c0_7 = arith.constant 0 : index
    %c0_8 = arith.constant 0 : index
    %7 = vector.load %arg1[%c1, %c0_7, %c0_8] : memref<2x8x256xbf16, #tpu.memory_space<vmem>>, vector<1x8x256xbf16>
    %8 = vector.shape_cast %7 : vector<1x8x256xbf16> to vector<8x256xbf16>
    %c0_9 = arith.constant 0 : index
    %c512 = arith.constant 512 : index
    %9 = vector.load %arg9[%c0_9, %c512] : memref<16x768xbf16, #tpu.memory_space<vmem>>, vector<8x256xbf16>
    tpu.vector_store %arg9[%c0_9, %c512], %8 {strides = array<i32>} : memref<16x768xbf16, #tpu.memory_space<vmem>>, vector<8x256xbf16>,
    %c0_10 = arith.constant 0 : index
    %c124 = arith.constant 124 : index
    %10 = vector.load %arg9[%c0_10, %c124] : memref<16x768xbf16, #tpu.memory_space<vmem>>, vector<8x640xbf16>
    %11 = arith.extf %10 : vector<8x640xbf16> to vector<8x640xf32>
    %c0_11 = arith.constant 0 : index
    %c126 = arith.constant 126 : index
    %12 = vector.load %arg9[%c0_11, %c126] : memref<16x768xbf16, #tpu.memory_space<vmem>>, vector<8x640xbf16>
    %13 = arith.extf %12 : vector<8x640xbf16> to vector<8x640xf32>
    %c0_12 = arith.constant 0 : index
    %c128_13 = arith.constant 128 : index
    %14 = vector.load %arg9[%c0_12, %c128_13] : memref<16x768xbf16, #tpu.memory_space<vmem>>, vector<8x640xbf16>
    %15 = arith.extf %14 : vector<8x640xbf16> to vector<8x640xf32>
    %16 = tpu.concatenate %11, %13, %15 in 0 : vector<8x640xf32>, vector<8x640xf32>, vector<8x640xf32> -> vector<24x640xf32>
    %17 = arith.truncf %16 : vector<24x640xf32> to vector<24x640xbf16>
    %c0_14 = arith.constant 0 : index
    %c0_15 = arith.constant 0 : index
    %18 = vector.load %arg2[%c0_14, %c0_15] : memref<16x24xbf16, #tpu.memory_space<vmem>>, vector<16x24xbf16>
    %cst_16 = arith.constant dense<0.000000e+00> : vector<16x640xf32>
    %19 = tpu.matmul %18, %17, %cst_16 {dimension_numbers = #tpu.dot_dimension_numbers<[1], [0], [0], [1], [0, 0, 1, 1], [], []>} : vector<16x24xbf16>, vector<24x640xbf16>, vector<16x640xf32> -> vector<16x640xf32>
    %c0_17 = arith.constant 0 : index
    %c0_18 = arith.constant 0 : index
    %20 = vector.load %arg3[%c0_17, %c0_18] : memref<16x1xf32, #tpu.memory_space<vmem>>, vector<16x1xf32>
    %21 = vector.broadcast %20 : vector<16x1xf32> to vector<16x640xf32>
    %22 = arith.addf %19, %21 : vector<16x640xf32>
    %cst_19 = arith.constant 0.000000e+00 : f32
    %23 = vector.broadcast %cst_19 : f32 to vector<16x640xf32>
    %24 = arith.maximumf %22, %23 : vector<16x640xf32>
    %cst_20 = arith.constant 0.000000e+00 : bf16
    %25 = vector.broadcast %cst_20 : bf16 to vector<16x128xbf16>
    %c0_21 = arith.constant 0 : index
    %c0_22 = arith.constant 0 : index
    %26 = vector.load %arg9[%c0_21, %c0_22] : memref<16x768xbf16, #tpu.memory_space<vmem>>, vector<16x128xbf16>
    tpu.vector_store %arg9[%c0_21, %c0_22], %25 {strides = array<i32>} : memref<16x768xbf16, #tpu.memory_space<vmem>>, vector<16x128xbf16>,
    %27 = vector.extract_strided_slice %24 {offsets = [0, 0], sizes = [16, 256], strides = [1, 1]} : vector<16x640xf32> to vector<16x256xf32>
    %28 = arith.truncf %27 : vector<16x256xf32> to vector<16x256xbf16>
    %c0_23 = arith.constant 0 : index
    %c128_24 = arith.constant 128 : index
    %29 = vector.load %arg9[%c0_23, %c128_24] : memref<16x768xbf16, #tpu.memory_space<vmem>>, vector<16x256xbf16>
    tpu.vector_store %arg9[%c0_23, %c128_24], %28 {strides = array<i32>} : memref<16x768xbf16, #tpu.memory_space<vmem>>, vector<16x256xbf16>,
    %cst_25 = arith.constant 0.000000e+00 : bf16
    %30 = vector.broadcast %cst_25 : bf16 to vector<16x128xbf16>
    %c0_26 = arith.constant 0 : index
    %c384_27 = arith.constant 384 : index
    %31 = vector.load %arg9[%c0_26, %c384_27] : memref<16x768xbf16, #tpu.memory_space<vmem>>, vector<16x128xbf16>
    tpu.vector_store %arg9[%c0_26, %c384_27], %30 {strides = array<i32>} : memref<16x768xbf16, #tpu.memory_space<vmem>>, vector<16x128xbf16>,
    %32 = vector.extract_strided_slice %24 {offsets = [0, 384], sizes = [16, 256], strides = [1, 1]} : vector<16x640xf32> to vector<16x256xf32>
    %33 = arith.truncf %32 : vector<16x256xf32> to vector<16x256xbf16>
    %c0_28 = arith.constant 0 : index
    %c512_29 = arith.constant 512 : index
    %34 = vector.load %arg9[%c0_28, %c512_29] : memref<16x768xbf16, #tpu.memory_space<vmem>>, vector<16x256xbf16>
    tpu.vector_store %arg9[%c0_28, %c512_29], %33 {strides = array<i32>} : memref<16x768xbf16, #tpu.memory_space<vmem>>, vector<16x256xbf16>,
    %c0_30 = arith.constant 0 : index
    %c124_31 = arith.constant 124 : index
    %35 = vector.load %arg9[%c0_30, %c124_31] : memref<16x768xbf16, #tpu.memory_space<vmem>>, vector<16x640xbf16>
    %36 = arith.extf %35 : vector<16x640xbf16> to vector<16x640xf32>
    %c0_32 = arith.constant 0 : index
    %c126_33 = arith.constant 126 : index
    %37 = vector.load %arg9[%c0_32, %c126_33] : memref<16x768xbf16, #tpu.memory_space<vmem>>, vector<16x640xbf16>
    %38 = arith.extf %37 : vector<16x640xbf16> to vector<16x640xf32>
    %c0_34 = arith.constant 0 : index
    %c128_35 = arith.constant 128 : index
    %39 = vector.load %arg9[%c0_34, %c128_35] : memref<16x768xbf16, #tpu.memory_space<vmem>>, vector<16x640xbf16>
    %40 = arith.extf %39 : vector<16x640xbf16> to vector<16x640xf32>
    %41 = tpu.concatenate %36, %38, %40 in 0 : vector<16x640xf32>, vector<16x640xf32>, vector<16x640xf32> -> vector<48x640xf32>
    %42 = arith.truncf %41 : vector<48x640xf32> to vector<48x640xbf16>
    %c0_36 = arith.constant 0 : index
    %c0_37 = arith.constant 0 : index
    %43 = vector.load %arg4[%c0_36, %c0_37] : memref<16x48xbf16, #tpu.memory_space<vmem>>, vector<16x48xbf16>
    %cst_38 = arith.constant dense<0.000000e+00> : vector<16x640xf32>
    %44 = tpu.matmul %43, %42, %cst_38 {dimension_numbers = #tpu.dot_dimension_numbers<[1], [0], [0], [1], [0, 0, 1, 1], [], []>} : vector<16x48xbf16>, vector<48x640xbf16>, vector<16x640xf32> -> vector<16x640xf32>
    %c0_39 = arith.constant 0 : index
    %c0_40 = arith.constant 0 : index
    %45 = vector.load %arg5[%c0_39, %c0_40] : memref<16x1xf32, #tpu.memory_space<vmem>>, vector<16x1xf32>
    %46 = vector.broadcast %45 : vector<16x1xf32> to vector<16x640xf32>
    %47 = arith.addf %44, %46 : vector<16x640xf32>
    %cst_41 = arith.constant 0.000000e+00 : f32
    %48 = vector.broadcast %cst_41 : f32 to vector<16x640xf32>
    %49 = arith.maximumf %47, %48 : vector<16x640xf32>
    %c0_42 = arith.constant 0 : index
    %c0_43 = arith.constant 0 : index
    %c0_44 = arith.constant 0 : index
    %50 = vector.load %arg1[%c0_42, %c0_43, %c0_44] : memref<2x8x256xbf16, #tpu.memory_space<vmem>>, vector<1x8x256xbf16>
    %51 = vector.shape_cast %50 : vector<1x8x256xbf16> to vector<8x256xbf16>
    %c0_45 = arith.constant 0 : index
    %c0_46 = arith.constant 0 : index
    %52 = vector.load %arg6[%c0_45, %c0_46] : memref<16x8xbf16, #tpu.memory_space<vmem>>, vector<16x8xbf16>
    %cst_47 = arith.constant dense<0.000000e+00> : vector<16x256xf32>
    %53 = tpu.matmul %52, %51, %cst_47 {dimension_numbers = #tpu.dot_dimension_numbers<[1], [0], [0], [1], [0, 0, 1, 1], [], []>} : vector<16x8xbf16>, vector<8x256xbf16>, vector<16x256xf32> -> vector<16x256xf32>
    %c0_48 = arith.constant 0 : index
    %c0_49 = arith.constant 0 : index
    %54 = vector.load %arg7[%c0_48, %c0_49] : memref<16x1xf32, #tpu.memory_space<vmem>>, vector<16x1xf32>
    %55 = vector.broadcast %54 : vector<16x1xf32> to vector<16x256xf32>
    %56 = arith.addf %53, %55 : vector<16x256xf32>
    %57 = vector.extract_strided_slice %49 {offsets = [0, 0], sizes = [16, 256], strides = [1, 1]} : vector<16x640xf32> to vector<16x256xf32>
    %58 = arith.addf %57, %56 : vector<16x256xf32>
    %cst_50 = arith.constant 0.000000e+00 : f32
    %59 = vector.broadcast %cst_50 : f32 to vector<16x256xf32>
    %60 = arith.maximumf %58, %59 : vector<16x256xf32>
    %c0_51 = arith.constant 0 : index
    %c0_52 = arith.constant 0 : index
    %c0_53 = arith.constant 0 : index
    %61 = vector.load %arg8[%c0_51, %c0_52, %c0_53] : memref<2x16x256xf32, #tpu.memory_space<vmem>>, vector<1x16x256xf32>
    %62 = vector.shape_cast %61 : vector<1x16x256xf32> to vector<16x256xf32>
    %63 = vector.shape_cast %60 : vector<16x256xf32> to vector<1x16x256xf32>
    tpu.vector_store %arg8[%c0_51, %c0_52, %c0_53], %63 {strides = array<i32>} : memref<2x16x256xf32, #tpu.memory_space<vmem>>, vector<1x16x256xf32>,
    %c1_54 = arith.constant 1 : index
    %c0_55 = arith.constant 0 : index
    %c0_56 = arith.constant 0 : index
    %64 = vector.load %arg1[%c1_54, %c0_55, %c0_56] : memref<2x8x256xbf16, #tpu.memory_space<vmem>>, vector<1x8x256xbf16>
    %65 = vector.shape_cast %64 : vector<1x8x256xbf16> to vector<8x256xbf16>
    %c0_57 = arith.constant 0 : index
    %c0_58 = arith.constant 0 : index
    %66 = vector.load %arg6[%c0_57, %c0_58] : memref<16x8xbf16, #tpu.memory_space<vmem>>, vector<16x8xbf16>
    %cst_59 = arith.constant dense<0.000000e+00> : vector<16x256xf32>
    %67 = tpu.matmul %66, %65, %cst_59 {dimension_numbers = #tpu.dot_dimension_numbers<[1], [0], [0], [1], [0, 0, 1, 1], [], []>} : vector<16x8xbf16>, vector<8x256xbf16>, vector<16x256xf32> -> vector<16x256xf32>
    %c0_60 = arith.constant 0 : index
    %c0_61 = arith.constant 0 : index
    %68 = vector.load %arg7[%c0_60, %c0_61] : memref<16x1xf32, #tpu.memory_space<vmem>>, vector<16x1xf32>
    %69 = vector.broadcast %68 : vector<16x1xf32> to vector<16x256xf32>
    %70 = arith.addf %67, %69 : vector<16x256xf32>
    %71 = vector.extract_strided_slice %49 {offsets = [0, 384], sizes = [16, 256], strides = [1, 1]} : vector<16x640xf32> to vector<16x256xf32>
    %72 = arith.addf %71, %70 : vector<16x256xf32>
    %cst_62 = arith.constant 0.000000e+00 : f32
    %73 = vector.broadcast %cst_62 : f32 to vector<16x256xf32>
    %74 = arith.maximumf %72, %73 : vector<16x256xf32>
    %c1_63 = arith.constant 1 : index
    %c0_64 = arith.constant 0 : index
    %c0_65 = arith.constant 0 : index
    %75 = vector.load %arg8[%c1_63, %c0_64, %c0_65] : memref<2x16x256xf32, #tpu.memory_space<vmem>>, vector<1x16x256xf32>
    %76 = vector.shape_cast %75 : vector<1x16x256xf32> to vector<16x256xf32>
    %77 = vector.shape_cast %74 : vector<16x256xf32> to vector<1x16x256xf32>
    tpu.vector_store %arg8[%c1_63, %c0_64, %c0_65], %77 {strides = array<i32>} : memref<2x16x256xf32, #tpu.memory_space<vmem>>, vector<1x16x256xf32>,
    return
  }
  func.func @transform_0(%arg0: i32) -> (i32, i32, i32) {
    %c0_i32 = arith.constant 0 : i32
    %c0_i32_0 = arith.constant 0 : i32
    %c0_i32_1 = arith.constant 0 : i32
    return %arg0, %c0_i32, %c0_i32_0 : i32, i32, i32
  }
  func.func @transform_1(%arg0: i32) -> (i32, i32) {
    %c0_i32 = arith.constant 0 : i32
    %c0_i32_0 = arith.constant 0 : i32
    %c0_i32_1 = arith.constant 0 : i32
    return %c0_i32, %c0_i32_0 : i32, i32
  }
  func.func @transform_2(%arg0: i32) -> (i32, i32) {
    %c0_i32 = arith.constant 0 : i32
    %c0_i32_0 = arith.constant 0 : i32
    %c0_i32_1 = arith.constant 0 : i32
    return %c0_i32, %c0_i32_0 : i32, i32
  }
  func.func @transform_3(%arg0: i32) -> (i32, i32) {
    %c0_i32 = arith.constant 0 : i32
    %c0_i32_0 = arith.constant 0 : i32
    %c0_i32_1 = arith.constant 0 : i32
    return %c0_i32, %c0_i32_0 : i32, i32
  }
  func.func @transform_4(%arg0: i32) -> (i32, i32) {
    %c0_i32 = arith.constant 0 : i32
    %c0_i32_0 = arith.constant 0 : i32
    %c0_i32_1 = arith.constant 0 : i32
    return %c0_i32, %c0_i32_0 : i32, i32
  }
  func.func @transform_5(%arg0: i32) -> (i32, i32) {
    %c0_i32 = arith.constant 0 : i32
    %c0_i32_0 = arith.constant 0 : i32
    %c0_i32_1 = arith.constant 0 : i32
    return %c0_i32, %c0_i32_0 : i32, i32
  }
  func.func @transform_6(%arg0: i32) -> (i32, i32) {
    %c0_i32 = arith.constant 0 : i32
    %c0_i32_0 = arith.constant 0 : i32
    %c0_i32_1 = arith.constant 0 : i32
    return %c0_i32, %c0_i32_0 : i32, i32
  }
  func.func @transform_7(%arg0: i32) -> (i32, i32, i32) {
    %c0_i32 = arith.constant 0 : i32
    %c0_i32_0 = arith.constant 0 : i32
    %c0_i32_1 = arith.constant 0 : i32
    return %arg0, %c0_i32, %c0_i32_0 : i32, i32, i32
  }
}

module attributes {stable_mosaic.version = 11 : i64} {
  func.func @_temporal_block_kernel(%arg0: i32, %arg1: memref<2x8x256xbf16, #tpu.memory_space<vmem>>, %arg2: memref<16x24xbf16, #tpu.memory_space<vmem>>, %arg3: memref<16x1xf32, #tpu.memory_space<vmem>>, %arg4: memref<16x48xbf16, #tpu.memory_space<vmem>>, %arg5: memref<16x1xf32, #tpu.memory_space<vmem>>, %arg6: memref<16x8xbf16, #tpu.memory_space<vmem>>, %arg7: memref<16x1xf32, #tpu.memory_space<vmem>>, %arg8: memref<2x16x256xf32, #tpu.memory_space<vmem>>, %arg9: memref<16x768xbf16, #tpu.memory_space<vmem>>) attributes {dimension_semantics = [#tpu.dimension_semantics<parallel>], iteration_bounds = array<i64: 2>, scalar_prefetch = 0 : i64, scratch_operands = 1 : i64, tpu.core_type = #tpu.core_type<tc>, window_params = [{transform_indices = @transform_0, window_bounds = array<i64: 2, 8, 256>}, {pipeline_mode = #tpu.pipeline_mode<synchronous>, transform_indices = @transform_1, window_bounds = array<i64: 16, 24>}, {pipeline_mode = #tpu.pipeline_mode<synchronous>, transform_indices = @transform_2, window_bounds = array<i64: 16, 1>}, {pipeline_mode = #tpu.pipeline_mode<synchronous>, transform_indices = @transform_3, window_bounds = array<i64: 16, 48>}, {pipeline_mode = #tpu.pipeline_mode<synchronous>, transform_indices = @transform_4, window_bounds = array<i64: 16, 1>}, {pipeline_mode = #tpu.pipeline_mode<synchronous>, transform_indices = @transform_5, window_bounds = array<i64: 16, 8>}, {pipeline_mode = #tpu.pipeline_mode<synchronous>, transform_indices = @transform_6, window_bounds = array<i64: 16, 1>}, {transform_indices = @transform_7, window_bounds = array<i64: 2, 16, 256>}]} {
    %cst = arith.constant 0.000000e+00 : bf16
    %0 = vector.broadcast %cst : bf16 to vector<8x128xbf16>
    %c0 = arith.constant 0 : index
    %c0_0 = arith.constant 0 : index
    %1 = vector.load %arg9[%c0, %c0_0] : memref<16x768xbf16, #tpu.memory_space<vmem>>, vector<8x128xbf16>
    tpu.vector_store %arg9[%c0, %c0_0], %0 {strides = array<i32>} : memref<16x768xbf16, #tpu.memory_space<vmem>>, vector<8x128xbf16>,
    %c0_1 = arith.constant 0 : index
    %c0_2 = arith.constant 0 : index
    %c0_3 = arith.constant 0 : index
    %2 = vector.load %arg1[%c0_1, %c0_2, %c0_3] : memref<2x8x256xbf16, #tpu.memory_space<vmem>>, vector<1x8x256xbf16>
    %3 = vector.shape_cast %2 : vector<1x8x256xbf16> to vector<8x256xbf16>
    %c0_4 = arith.constant 0 : index
    %c128 = arith.constant 128 : index
    %4 = vector.load %arg9[%c0_4, %c128] : memref<16x768xbf16, #tpu.memory_space<vmem>>, vector<8x256xbf16>
    tpu.vector_store %arg9[%c0_4, %c128], %3 {strides = array<i32>} : memref<16x768xbf16, #tpu.memory_space<vmem>>, vector<8x256xbf16>,
    %cst_5 = arith.constant 0.000000e+00 : bf16
    %5 = vector.broadcast %cst_5 : bf16 to vector<8x128xbf16>
    %c0_6 = arith.constant 0 : index
    %c384 = arith.constant 384 : index
    %6 = vector.load %arg9[%c0_6, %c384] : memref<16x768xbf16, #tpu.memory_space<vmem>>, vector<8x128xbf16>
    tpu.vector_store %arg9[%c0_6, %c384], %5 {strides = array<i32>} : memref<16x768xbf16, #tpu.memory_space<vmem>>, vector<8x128xbf16>,
    %c1 = arith.constant 1 : index
    %c0_7 = arith.constant 0 : index
    %c0_8 = arith.constant 0 : index
    %7 = vector.load %arg1[%c1, %c0_7, %c0_8] : memref<2x8x256xbf16, #tpu.memory_space<vmem>>, vector<1x8x256xbf16>
    %8 = vector.shape_cast %7 : vector<1x8x256xbf16> to vector<8x256xbf16>
    %c0_9 = arith.constant 0 : index
    %c512 = arith.constant 512 : index
    %9 = vector.load %arg9[%c0_9, %c512] : memref<16x768xbf16, #tpu.memory_space<vmem>>, vector<8x256xbf16>
    tpu.vector_store %arg9[%c0_9, %c512], %8 {strides = array<i32>} : memref<16x768xbf16, #tpu.memory_space<vmem>>, vector<8x256xbf16>,
    %c0_10 = arith.constant 0 : index
    %c124 = arith.constant 124 : index
    %10 = vector.load %arg9[%c0_10, %c124] : memref<16x768xbf16, #tpu.memory_space<vmem>>, vector<8x640xbf16>
    %11 = arith.extf %10 : vector<8x640xbf16> to vector<8x640xf32>
    %c0_11 = arith.constant 0 : index
    %c126 = arith.constant 126 : index
    %12 = vector.load %arg9[%c0_11, %c126] : memref<16x768xbf16, #tpu.memory_space<vmem>>, vector<8x640xbf16>
    %13 = arith.extf %12 : vector<8x640xbf16> to vector<8x640xf32>
    %c0_12 = arith.constant 0 : index
    %c128_13 = arith.constant 128 : index
    %14 = vector.load %arg9[%c0_12, %c128_13] : memref<16x768xbf16, #tpu.memory_space<vmem>>, vector<8x640xbf16>
    %15 = arith.extf %14 : vector<8x640xbf16> to vector<8x640xf32>
    %16 = tpu.concatenate %11, %13, %15 in 0 : vector<8x640xf32>, vector<8x640xf32>, vector<8x640xf32> -> vector<24x640xf32>
    %17 = arith.truncf %16 : vector<24x640xf32> to vector<24x640xbf16>
    %c0_14 = arith.constant 0 : index
    %c0_15 = arith.constant 0 : index
    %18 = vector.load %arg2[%c0_14, %c0_15] : memref<16x24xbf16, #tpu.memory_space<vmem>>, vector<16x24xbf16>
    %cst_16 = arith.constant dense<0.000000e+00> : vector<16x640xf32>
    %19 = tpu.matmul %18, %17, %cst_16 {dimension_numbers = #tpu.dot_dimension_numbers<[1], [0], [0], [1], [0, 0, 1, 1], [], []>} : vector<16x24xbf16>, vector<24x640xbf16>, vector<16x640xf32> -> vector<16x640xf32>
    %c0_17 = arith.constant 0 : index
    %c0_18 = arith.constant 0 : index
    %20 = vector.load %arg3[%c0_17, %c0_18] : memref<16x1xf32, #tpu.memory_space<vmem>>, vector<16x1xf32>
    %21 = vector.broadcast %20 : vector<16x1xf32> to vector<16x640xf32>
    %22 = arith.addf %19, %21 : vector<16x640xf32>
    %cst_19 = arith.constant 0.000000e+00 : f32
    %23 = vector.broadcast %cst_19 : f32 to vector<16x640xf32>
    %24 = arith.maximumf %22, %23 : vector<16x640xf32>
    %cst_20 = arith.constant 0.000000e+00 : bf16
    %25 = vector.broadcast %cst_20 : bf16 to vector<16x128xbf16>
    %c0_21 = arith.constant 0 : index
    %c0_22 = arith.constant 0 : index
    %26 = vector.load %arg9[%c0_21, %c0_22] : memref<16x768xbf16, #tpu.memory_space<vmem>>, vector<16x128xbf16>
    tpu.vector_store %arg9[%c0_21, %c0_22], %25 {strides = array<i32>} : memref<16x768xbf16, #tpu.memory_space<vmem>>, vector<16x128xbf16>,
    %27 = vector.extract_strided_slice %24 {offsets = [0, 0], sizes = [16, 256], strides = [1, 1]} : vector<16x640xf32> to vector<16x256xf32>
    %28 = arith.truncf %27 : vector<16x256xf32> to vector<16x256xbf16>
    %c0_23 = arith.constant 0 : index
    %c128_24 = arith.constant 128 : index
    %29 = vector.load %arg9[%c0_23, %c128_24] : memref<16x768xbf16, #tpu.memory_space<vmem>>, vector<16x256xbf16>
    tpu.vector_store %arg9[%c0_23, %c128_24], %28 {strides = array<i32>} : memref<16x768xbf16, #tpu.memory_space<vmem>>, vector<16x256xbf16>,
    %cst_25 = arith.constant 0.000000e+00 : bf16
    %30 = vector.broadcast %cst_25 : bf16 to vector<16x128xbf16>
    %c0_26 = arith.constant 0 : index
    %c384_27 = arith.constant 384 : index
    %31 = vector.load %arg9[%c0_26, %c384_27] : memref<16x768xbf16, #tpu.memory_space<vmem>>, vector<16x128xbf16>
    tpu.vector_store %arg9[%c0_26, %c384_27], %30 {strides = array<i32>} : memref<16x768xbf16, #tpu.memory_space<vmem>>, vector<16x128xbf16>,
    %32 = vector.extract_strided_slice %24 {offsets = [0, 384], sizes = [16, 256], strides = [1, 1]} : vector<16x640xf32> to vector<16x256xf32>
    %33 = arith.truncf %32 : vector<16x256xf32> to vector<16x256xbf16>
    %c0_28 = arith.constant 0 : index
    %c512_29 = arith.constant 512 : index
    %34 = vector.load %arg9[%c0_28, %c512_29] : memref<16x768xbf16, #tpu.memory_space<vmem>>, vector<16x256xbf16>
    tpu.vector_store %arg9[%c0_28, %c512_29], %33 {strides = array<i32>} : memref<16x768xbf16, #tpu.memory_space<vmem>>, vector<16x256xbf16>,
    %c0_30 = arith.constant 0 : index
    %c124_31 = arith.constant 124 : index
    %35 = vector.load %arg9[%c0_30, %c124_31] : memref<16x768xbf16, #tpu.memory_space<vmem>>, vector<16x640xbf16>
    %36 = arith.extf %35 : vector<16x640xbf16> to vector<16x640xf32>
    %c0_32 = arith.constant 0 : index
    %c126_33 = arith.constant 126 : index
    %37 = vector.load %arg9[%c0_32, %c126_33] : memref<16x768xbf16, #tpu.memory_space<vmem>>, vector<16x640xbf16>
    %38 = arith.extf %37 : vector<16x640xbf16> to vector<16x640xf32>
    %c0_34 = arith.constant 0 : index
    %c128_35 = arith.constant 128 : index
    %39 = vector.load %arg9[%c0_34, %c128_35] : memref<16x768xbf16, #tpu.memory_space<vmem>>, vector<16x640xbf16>
    %40 = arith.extf %39 : vector<16x640xbf16> to vector<16x640xf32>
    %41 = tpu.concatenate %36, %38, %40 in 0 : vector<16x640xf32>, vector<16x640xf32>, vector<16x640xf32> -> vector<48x640xf32>
    %42 = arith.truncf %41 : vector<48x640xf32> to vector<48x640xbf16>
    %c0_36 = arith.constant 0 : index
    %c0_37 = arith.constant 0 : index
    %43 = vector.load %arg4[%c0_36, %c0_37] : memref<16x48xbf16, #tpu.memory_space<vmem>>, vector<16x48xbf16>
    %cst_38 = arith.constant dense<0.000000e+00> : vector<16x640xf32>
    %44 = tpu.matmul %43, %42, %cst_38 {dimension_numbers = #tpu.dot_dimension_numbers<[1], [0], [0], [1], [0, 0, 1, 1], [], []>} : vector<16x48xbf16>, vector<48x640xbf16>, vector<16x640xf32> -> vector<16x640xf32>
    %c0_39 = arith.constant 0 : index
    %c0_40 = arith.constant 0 : index
    %45 = vector.load %arg5[%c0_39, %c0_40] : memref<16x1xf32, #tpu.memory_space<vmem>>, vector<16x1xf32>
    %46 = vector.broadcast %45 : vector<16x1xf32> to vector<16x640xf32>
    %47 = arith.addf %44, %46 : vector<16x640xf32>
    %cst_41 = arith.constant 0.000000e+00 : f32
    %48 = vector.broadcast %cst_41 : f32 to vector<16x640xf32>
    %49 = arith.maximumf %47, %48 : vector<16x640xf32>
    %c0_42 = arith.constant 0 : index
    %c0_43 = arith.constant 0 : index
    %c0_44 = arith.constant 0 : index
    %50 = vector.load %arg1[%c0_42, %c0_43, %c0_44] : memref<2x8x256xbf16, #tpu.memory_space<vmem>>, vector<1x8x256xbf16>
    %51 = vector.shape_cast %50 : vector<1x8x256xbf16> to vector<8x256xbf16>
    %c0_45 = arith.constant 0 : index
    %c0_46 = arith.constant 0 : index
    %52 = vector.load %arg6[%c0_45, %c0_46] : memref<16x8xbf16, #tpu.memory_space<vmem>>, vector<16x8xbf16>
    %cst_47 = arith.constant dense<0.000000e+00> : vector<16x256xf32>
    %53 = tpu.matmul %52, %51, %cst_47 {dimension_numbers = #tpu.dot_dimension_numbers<[1], [0], [0], [1], [0, 0, 1, 1], [], []>} : vector<16x8xbf16>, vector<8x256xbf16>, vector<16x256xf32> -> vector<16x256xf32>
    %c0_48 = arith.constant 0 : index
    %c0_49 = arith.constant 0 : index
    %54 = vector.load %arg7[%c0_48, %c0_49] : memref<16x1xf32, #tpu.memory_space<vmem>>, vector<16x1xf32>
    %55 = vector.broadcast %54 : vector<16x1xf32> to vector<16x256xf32>
    %56 = arith.addf %53, %55 : vector<16x256xf32>
    %57 = vector.extract_strided_slice %49 {offsets = [0, 0], sizes = [16, 256], strides = [1, 1]} : vector<16x640xf32> to vector<16x256xf32>
    %58 = arith.addf %57, %56 : vector<16x256xf32>
    %cst_50 = arith.constant 0.000000e+00 : f32
    %59 = vector.broadcast %cst_50 : f32 to vector<16x256xf32>
    %60 = arith.maximumf %58, %59 : vector<16x256xf32>
    %c0_51 = arith.constant 0 : index
    %c0_52 = arith.constant 0 : index
    %c0_53 = arith.constant 0 : index
    %61 = vector.load %arg8[%c0_51, %c0_52, %c0_53] : memref<2x16x256xf32, #tpu.memory_space<vmem>>, vector<1x16x256xf32>
    %62 = vector.shape_cast %61 : vector<1x16x256xf32> to vector<16x256xf32>
    %63 = vector.shape_cast %60 : vector<16x256xf32> to vector<1x16x256xf32>
    tpu.vector_store %arg8[%c0_51, %c0_52, %c0_53], %63 {strides = array<i32>} : memref<2x16x256xf32, #tpu.memory_space<vmem>>, vector<1x16x256xf32>,
    %c1_54 = arith.constant 1 : index
    %c0_55 = arith.constant 0 : index
    %c0_56 = arith.constant 0 : index
    %64 = vector.load %arg1[%c1_54, %c0_55, %c0_56] : memref<2x8x256xbf16, #tpu.memory_space<vmem>>, vector<1x8x256xbf16>
    %65 = vector.shape_cast %64 : vector<1x8x256xbf16> to vector<8x256xbf16>
    %c0_57 = arith.constant 0 : index
    %c0_58 = arith.constant 0 : index
    %66 = vector.load %arg6[%c0_57, %c0_58] : memref<16x8xbf16, #tpu.memory_space<vmem>>, vector<16x8xbf16>
    %cst_59 = arith.constant dense<0.000000e+00> : vector<16x256xf32>
    %67 = tpu.matmul %66, %65, %cst_59 {dimension_numbers = #tpu.dot_dimension_numbers<[1], [0], [0], [1], [0, 0, 1, 1], [], []>} : vector<16x8xbf16>, vector<8x256xbf16>, vector<16x256xf32> -> vector<16x256xf32>
    %c0_60 = arith.constant 0 : index
    %c0_61 = arith.constant 0 : index
    %68 = vector.load %arg7[%c0_60, %c0_61] : memref<16x1xf32, #tpu.memory_space<vmem>>, vector<16x1xf32>
    %69 = vector.broadcast %68 : vector<16x1xf32> to vector<16x256xf32>
    %70 = arith.addf %67, %69 : vector<16x256xf32>
    %71 = vector.extract_strided_slice %49 {offsets = [0, 384], sizes = [16, 256], strides = [1, 1]} : vector<16x640xf32> to vector<16x256xf32>
    %72 = arith.addf %71, %70 : vector<16x256xf32>
    %cst_62 = arith.constant 0.000000e+00 : f32
    %73 = vector.broadcast %cst_62 : f32 to vector<16x256xf32>
    %74 = arith.maximumf %72, %73 : vector<16x256xf32>
    %c1_63 = arith.constant 1 : index
    %c0_64 = arith.constant 0 : index
    %c0_65 = arith.constant 0 : index
    %75 = vector.load %arg8[%c1_63, %c0_64, %c0_65] : memref<2x16x256xf32, #tpu.memory_space<vmem>>, vector<1x16x256xf32>
    %76 = vector.shape_cast %75 : vector<1x16x256xf32> to vector<16x256xf32>
    %77 = vector.shape_cast %74 : vector<16x256xf32> to vector<1x16x256xf32>
    tpu.vector_store %arg8[%c1_63, %c0_64, %c0_65], %77 {strides = array<i32>} : memref<2x16x256xf32, #tpu.memory_space<vmem>>, vector<1x16x256xf32>,
    return
  }
  func.func @transform_0(%arg0: i32) -> (i32, i32, i32) {
    %c0_i32 = arith.constant 0 : i32
    %c0_i32_0 = arith.constant 0 : i32
    %c0_i32_1 = arith.constant 0 : i32
    return %arg0, %c0_i32, %c0_i32_0 : i32, i32, i32
  }
  func.func @transform_1(%arg0: i32) -> (i32, i32) {
    %c0_i32 = arith.constant 0 : i32
    %c0_i32_0 = arith.constant 0 : i32
    %c0_i32_1 = arith.constant 0 : i32
    return %c0_i32, %c0_i32_0 : i32, i32
  }
  func.func @transform_2(%arg0: i32) -> (i32, i32) {
    %c0_i32 = arith.constant 0 : i32
    %c0_i32_0 = arith.constant 0 : i32
    %c0_i32_1 = arith.constant 0 : i32
    return %c0_i32, %c0_i32_0 : i32, i32
  }
  func.func @transform_3(%arg0: i32) -> (i32, i32) {
    %c0_i32 = arith.constant 0 : i32
    %c0_i32_0 = arith.constant 0 : i32
    %c0_i32_1 = arith.constant 0 : i32
    return %c0_i32, %c0_i32_0 : i32, i32
  }
  func.func @transform_4(%arg0: i32) -> (i32, i32) {
    %c0_i32 = arith.constant 0 : i32
    %c0_i32_0 = arith.constant 0 : i32
    %c0_i32_1 = arith.constant 0 : i32
    return %c0_i32, %c0_i32_0 : i32, i32
  }
  func.func @transform_5(%arg0: i32) -> (i32, i32) {
    %c0_i32 = arith.constant 0 : i32
    %c0_i32_0 = arith.constant 0 : i32
    %c0_i32_1 = arith.constant 0 : i32
    return %c0_i32, %c0_i32_0 : i32, i32
  }
  func.func @transform_6(%arg0: i32) -> (i32, i32) {
    %c0_i32 = arith.constant 0 : i32
    %c0_i32_0 = arith.constant 0 : i32
    %c0_i32_1 = arith.constant 0 : i32
    return %c0_i32, %c0_i32_0 : i32, i32
  }
  func.func @transform_7(%arg0: i32) -> (i32, i32, i32) {
    %c0_i32 = arith.constant 0 : i32
    %c0_i32_0 = arith.constant 0 : i32
    %c0_i32_1 = arith.constant 0 : i32
    return %arg0, %c0_i32, %c0_i32_0 : i32, i32, i32
  }
}

</mosaic_0001>

<bundles_post_ra>
// kernel: tpu_custom_call.1
= control target key start
LH: loop header
LB: loop body
LE: loop exit
PB: predicated region body
PF: predicated region fallthrough
CT: control target
= control target key end

     0   :  { %12 = vsyncpa [#allocation4], 0  ;;  %s1872_s0 = inlined_call_operand.vmem [shape: bf16[4,8,256], index: 0, kind: input, shape index: {}]   ;;  %s1873_s1 = inlined_call_operand.vmem [shape: bf16[16,24], index: 1, kind: input, shape index: {}]   ;;  %s1874_s2 = inlined_call_operand.vmem [shape: f32[16,1], index: 2, kind: input, shape index: {}]   ;;  %s1875_s3 = inlined_call_operand.vmem [shape: bf16[16,48], index: 3, kind: input, shape index: {}]   ;;  %s1876_s4 = inlined_call_operand.vmem [shape: f32[16,1], index: 4, kind: input, shape index: {}]   ;;  %s1877_s5 = inlined_call_operand.vmem [shape: bf16[16,8], index: 5, kind: input, shape index: {}]   ;;  %s1878_s6 = inlined_call_operand.vmem [shape: f32[16,1], index: 6, kind: input, shape index: {}]   ;;  %s1879_s7 = inlined_call_operand.hbm [shape: f32[4,16,256], index: 7, kind: output, shape index: {}]  }
   0x1   :  { %14 = vsyncpa [#allocation4 + $0x1], 0  ;;  %s1569_s24 = smov 0   ;;  %s1571_s25 = smov 0  }
   0x2   :  { %s1573_s26 = smov 0   ;;  %s1575_s27 = smov 0  }
   0x3 LB: > { %s1590_s28 = sadd.s32 4294967295, %s1518_s27   ;;  %s1247_s29 = sadd.s32 4294967294, %s1518_s27   ;;  %s1518_s27 = sphi %s1575_s27, %s1885_s27   ;;  %s1514_s26 = sphi %s1573_s26, %s1884_s26   ;;  %s1510_s25 = sphi %s1571_s25, %s1883_s25   ;;  %s1506_s24 = sphi %s1569_s24, %s1882_s24  }
   0x4   : > { %s1594_s30 = sadd.s32 1, %s1518_s27   ;;  %s179_s8 = sadd.s32 1, %s1514_s26 }
   0x5   : > { %s176_s9 = ssub.s32 %s1518_s27, %s1594_s30  ;;  %p189_p0 = scmp.ne.s32.totalorder %s1514_s26, %s1510_s25 }
   0x6   : > { %p177_p1 = scmp.eq.s32.totalorder %s176_s9, 0  ;;  %p190_p2 = scmp.eq.s32.totalorder %s1590_s28, 1 }
   0x7   : > { %p195_p3 = scmp.ne.s32.totalorder %s1510_s25, %s1506_s24  ;;  %p196_p4 = scmp.eq.s32.totalorder %s1247_s29, 1 }
   0x8   : > { %s1605_s10 = scalar_select %p177_p1, %s1514_s26, %s179_s8  }
   0x9   : > { %p1607_p5 = por %p190_p2, %p189_p0  ;;  %p1611_p6 = por %p196_p4, %p195_p3 }
   0xa   : > { %p1250_p7 = scmp.ge.s32.totalorder %s1518_s27, 1  ;;  %p242_p8 = scmp.lt.s32.totalorder %s1518_s27, 3 }
   0xc   : > { %p243_p9 = pnand %p1250_p7, %p242_p8 }
   0xd   : > { %s1252_s13 = sshll.u32 (!%p243_p9), %s1590_s28, 1  ;;  %v1520_v0 = vmov (!%p243_p9), 0   ;;  %s1521_s18 = smov (!%p243_p9), 124   ;;  %vm337_vm0 = vcmask (!%p243_p9), 1031168   ;;  %vm359_vm1 = vcmask (!%p243_p9), 1014784   ;;  %v384_v57 = vld [vmem:[%s1874_s2] sm:$0xff] (!%p243_p9) }
   0xe   : > { %246 = sbr.rel (%p243_p9) target bundleno = 1017 (0x3f9), region = 48  ;;  %p276_p10 = scmp.lt.s32.totalorder (!%p243_p9), %s1252_s13, 3  ;;  %295 = vst [vmem:[#allocation2 + $0x18] sm:$0xf] (!%p243_p9), %v1520_v0  ;;  %284 = vst [vmem:[#allocation2] sm:$0xf] (!%p243_p9), %v1520_v0  ;;  %505 = vmatprep.mubr.bf16.mxu0 (!%p243_p9), %v1520_v0  ;;  %548 = vmatprep.mubr.bf16.mxu1 (!%p243_p9), %v1520_v0 }
   0xf   : > { %1391 = vset.pattern.permute.xlu0 (!%p243_p9), %v1520_v0  ;;  %1392 = vset.pattern.permute.xlu1 (!%p243_p9), %v1520_v0  ;;  %s1522_s19 = smov (!%p243_p9), 126   ;;  %s1523_s20 = smov (!%p243_p9), 4   ;;  %v385_v58 = vld [vmem:[%s1874_s2 + $0x8] sm:$0xff] (!%p243_p9)  ;;  %vm437_vm2 = vcmask (!%p243_p9), 31744   ;;  %vm457_vm3 = vcmask (!%p243_p9), 1043456   ;;  %vm453_vm4 = vcmask (!%p243_p9), 195584  }
  0x10   : > { %vm1525_vm5 = vmmov (!%p243_p9), 0   ;;  %vm853_vm6 = vcmask (!%p243_p9), 392192   ;;  %vm1015_vm7 = vcmask (!%p243_p9), 64512   ;;  %s1293_s15 = sshll.u32 (!%p243_p9), %s1590_s28, 10  ;;  %s1526_s22 = smov (!%p243_p9), [#allocation3]  }
  0x11   : > { %s1825_s28 = scalar_lea.hbm (!%p243_p9), %s1879_s7, %s1293_s15  ;;  %s1460_s23 = sshll.u32 (!%p243_p9), %s1526_s22, 4  ;;  %s1461_s23 = int_to_ptr.vmem [resolvable:$false] %s1460_s23 }
  0x12   : > { %s1462_s29 = scalar_lea.vmem (!%p243_p9), %s1461_s23, 2048 }
  0x15   : > { %s1887_s13 = smov (!%p276_p10, %s1252_s13), 3  ;;  %v310_v5 = vld [vmem:[#allocation2 + $0x18] sm:$0xf]  ;;  %v307_v6 = vld [vmem:[#allocation2] sm:$0xf] }
  0x16   : > { %s1291_s14 = sshll.u32 %s1887_s13, 3  ;;  %611 = vst [vmem:[#allocation2 + $0x18] sm:$0xff] %v1520_v0  ;;  %606 = vst [vmem:[#allocation2] sm:$0xff] %v1520_v0  ;;  %v1641_v12 = vunpack.c.l.bf16 %v310_v5  ;;  %v313_v13 = vunpack.c.l.bf16 %v307_v6  ;;  %s272_s13 = sand.u32 1, %s1510_s25  }
  0x17   : > { %s280_s17 = scalar_lea.vmem %s1872_s0, %s1291_s14  ;;  %s1818_s14 = sshll.u32 %s272_s13, 6 }
  0x18   : > { %v285_v1 = vld [vmem:[%s280_s17] sm:$0xff]  ;;  %v1257_v2 = vld [vmem:[%s280_s17 + $0x8] sm:$0xff]  ;;  %v1371_v16 = vpack.i.bf16 %v313_v13, %v1641_v12  ;;  %s274_s16 = scalar_lea.vmem [#allocation3], %s1818_s14  ;;  %s1831_s21 = scalar_lea.sflag [#allocation4], %s272_s13 }
  0x19   : > { %v1627_v3 = vcombine.low %v285_v1, %v285_v1  ;;  %v1629_v4 = vcombine.high %v285_v1, %v285_v1  ;;  %v1631_v7 = vcombine.low %v1257_v2, %v1257_v2  ;;  %v1633_v8 = vcombine.high %v1257_v2, %v1257_v2  ;;  %s1185_s17 = sshll.u32 %s274_s16, 4  ;;  %s1827_s17 = int_to_ptr.vmem [resolvable:$true] %s1185_s17 }
  0x1a   : > { %p1463_p0 = scmp.lt.s32.totalorder %s1827_s17, %s1461_s23 }
  0x1b   : > { %293 = vst [vmem:[#allocation2 + $0x8] sm:$0xf] %v1627_v3  ;;  %294 = vst [vmem:[#allocation2 + $0x10] sm:$0xf] %v1629_v4 }
  0x1c   : > { %305 = vst [vmem:[#allocation2 + $0x20] sm:$0xf] %v1631_v7  ;;  %306 = vst [vmem:[#allocation2 + $0x28] sm:$0xf] %v1633_v8 }
  0x22   : > { %v308_v9 = vld [vmem:[#allocation2 + $0x8] ss:$8 sps:$4 sm:$0xff]  }
  0x23   : > { %v314_v10 = vunpack.c.l.bf16 %v308_v9  ;;  %v315_v11 = vunpack.c.h.bf16 %v308_v9  ;;  %v311_v14 = vld [vmem:[#allocation2 + $0x20] ss:$8 sps:$4 sm:$0xff]  }
  0x24   : > { %v317_v17 = vunpack.c.l.bf16 %v311_v14  ;;  %v318_v18 = vunpack.c.h.bf16 %v311_v14  ;;  %v1524_v14 = vmov 0.0  }
  0x25   : > { %v1376_v15 = vpack.i.bf16 %v315_v11, %v314_v10 }
  0x26   : > { %v1386_v19 = vpack.i.bf16 %v318_v18, %v317_v17 }
  0x27   : > { %1377 = vrot.lane.b32.xlu1 %v1376_v15, %s1521_s18  ;;  %1367 = vrot.lane.b32.xlu0 %v1376_v15, %s1522_s19 }
  0x2b   : > { %353 = vrot.lane.b32.xlu1 %v1641_v12, %s1521_s18  ;;  %1372 = vrot.lane.b32.xlu0 %v1371_v16, %s1522_s19 }
  0x2f   : > { %1387 = vrot.lane.b32.xlu1 %v1386_v19, %s1521_s18  ;;  %1382 = vrot.lane.b32.xlu0 %v1386_v19, %s1522_s19 }
  0x99   : > { %v1378_v20 = vpop.permute.xlu1 %1377  ;;  %v1368_v21 = vpop.permute.xlu0 %1367 }
  0x9a   : > { %v1379_v22 = vunpack.i.l.bf16 %v1378_v20  ;;  %v1370_v23 = vunpack.i.h.bf16 %v1368_v21  ;;  %v1369_v24 = vunpack.i.l.bf16 %v1368_v21  ;;  %v1380_v30 = vunpack.i.h.bf16 %v1378_v20 }
  0x9c   : > { %v376_v25 = vpack.c.bf16 %v1379_v22, %v1379_v22  ;;  %v339_v26 = vsel %vm337_vm0, %v1369_v24, %v1370_v23  ;;  %v360_v41 = vsel %vm359_vm1, %v1379_v22, %v1380_v30 }
  0x9d   : > { %v354_v27 = vpop.permute.xlu1 %353  ;;  %v1373_v28 = vpop.permute.xlu0 %1372  ;;  %v371_v29 = vpack.c.bf16 %v339_v26, %v314_v10  ;;  %v377_v45 = vpack.c.bf16 %v360_v41, %v360_v41 }
  0x9e   : > { %v1375_v31 = vunpack.i.h.bf16 %v1373_v28  ;;  %v1374_v32 = vunpack.i.l.bf16 %v1373_v28  ;;  %425 = vrot.lane.b32.xlu1 %v376_v25, %s1523_s20  ;;  %v361_v38 = vsel %vm359_vm1, %v1380_v30, %v354_v27  ;;  %v628_v28 = vunpack.c.h.bf16 %v1520_v0 }
  0x9f   : > { %415 = vrot.lane.b32.xlu0 %v371_v29, %s1523_s20  ;;  %v378_v44 = vpack.c.bf16 %v361_v38, %v361_v38 }
  0xa0   : > { %v340_v33 = vsel %vm337_vm0, %v1370_v23, %v1374_v32  ;;  %v338_v34 = vsel %vm337_vm0, %v1375_v31, %v1369_v24 }
  0xa1   : > { %v1383_v35 = vpop.permute.xlu0 %1382  ;;  %v372_v36 = vpack.c.bf16 %v340_v33, %v315_v11  ;;  %v370_v37 = vpack.c.bf16 %v338_v34, %v313_v13  ;;  %v1388_v42 = vpop.permute.xlu1 %1387  ;;  %v1452_v11 = vld [vmem:[%s1873_s1] sm:$0xff]  }
  0xa2   : > { %v1385_v39 = vunpack.i.h.bf16 %v1383_v35  ;;  %v1384_v40 = vunpack.i.l.bf16 %v1383_v35  ;;  %v1389_v46 = vunpack.i.l.bf16 %v1388_v42  ;;  %v1390_v49 = vunpack.i.h.bf16 %v1388_v42 }
  0xa3   : > { %417 = vrot.lane.b32.xlu1 %v372_v36, %s1523_s20  ;;  %413 = vrot.lane.b32.xlu0 %v370_v37, %s1523_s20 }
  0xa4   : > { %v342_v43 = vsel %vm337_vm0, %v1384_v40, %v1385_v39  ;;  %v375_v47 = vpack.c.bf16 %v1385_v39, %v318_v18  ;;  %v362_v50 = vsel %vm359_vm1, %v354_v27, %v1389_v46  ;;  %v341_v51 = vsel %vm337_vm0, %v1374_v32, %v1384_v40 }
  0xa5   : > { %v374_v48 = vpack.c.bf16 %v342_v43, %v317_v17  ;;  %v363_v52 = vsel %vm359_vm1, %v1389_v46, %v1390_v49  ;;  %v379_v53 = vpack.c.bf16 %v362_v50, %v362_v50  ;;  %v373_v54 = vpack.c.bf16 %v341_v51, %v1641_v12 }
  0xa6   : > { %v381_v55 = vpack.c.bf16 %v1390_v49, %v1390_v49  ;;  %v380_v56 = vpack.c.bf16 %v363_v52, %v363_v52  ;;  %v622_v27 = vunpack.c.l.bf16 %v1520_v0 }
  0xa7   : > { %429 = vrot.lane.b32.xlu1 %v378_v44, %s1523_s20  ;;  %427 = vrot.lane.b32.xlu0 %v377_v45, %s1523_s20 }
  0xa8   : > { %v1393_v29 = vpack.i.bf16 %v628_v28, %v622_v27 }
  0xab   : > { %421 = vrot.lane.b32.xlu1 %v374_v48, %s1523_s20  ;;  %423 = vrot.lane.b32.xlu0 %v375_v47, %s1523_s20 }
  0xaf   : > { %431 = vrot.lane.b32.xlu1 %v379_v53, %s1523_s20  ;;  %419 = vrot.lane.b32.xlu0 %v373_v54, %s1523_s20 }
  0xb3   : > { %435 = vrot.lane.b32.xlu1 %v381_v55, %s1523_s20  ;;  %433 = vrot.lane.b32.xlu0 %v380_v56, %s1523_s20 }
  0xb7   : > { %388 = vperm.xlu0 %1391, %v384_v57   ;;  %393 = vperm.xlu1 %1392, %v385_v58  }
  0xbb   : > { %1394 = vrot.lane.b32.xlu0 %v1393_v29, %s1522_s19 }
 0x110   : > { %v426_v59 = vpop.permute.xlu1 %425 }
 0x111   : > { %v416_v60 = vpop.permute.xlu0 %415 }
 0x115   : > { %v418_v61 = vpop.permute.xlu1 %417  ;;  %v414_v62 = vpop.permute.xlu0 %413 }
 0x116   : > { %v439_v63 = vsel %vm437_vm2, %v416_v60, %v418_v61  ;;  %v438_v1 = vsel %vm437_vm2, %v414_v62, %v416_v60 }
 0x117   : > { %473 = vmatprep.subr.bf16.mxu0 %v439_v63 }
 0x118   : > { %474 = vmatpush1.bf16.msra.mxu0 %v438_v1 }
 0x119   : > { %v430_v2 = vpop.permute.xlu1 %429  ;;  %v428_v5 = vpop.permute.xlu0 %427 }
 0x11a   : > { %v443_v6 = vsel %vm437_vm2, %v426_v59, %v428_v5  ;;  %v444_v9 = vsel %vm437_vm2, %v428_v5, %v430_v2 }
 0x11b   : > { %1261 = vmatprep.subr.msk.bf16.mxu0 %vm457_vm3, %v444_v9  ;;  %v459_v10 = vsel %vm457_vm3, %v443_v6, 0 }
 0x11c   : > { %476 = vmatpush1.bf16.msra.mxu0 %v459_v10 }
 0x11d   : > { %v422_v12 = vpop.permute.xlu1 %421  ;;  %v424_v13 = vpop.permute.xlu0 %423  ;;  %1301 = vmatprep.subr.bf16.mxu0 %v1524_v14 }
 0x11e   : > { %v442_v15 = vsel %vm437_vm2, %v422_v12, %v424_v13 }
 0x11f   : > { %1262 = vmatmul.mubr.msk.bf16.vlgmr.msra.gmra.mrb[0].mxu0 %vm453_vm4, %v1452_v11 }
 0x120   : > { %1302 = vmatpush3.bf16.msra.mxu0 %v442_v15  ;;  %1305 = vmatprep.mubr.msk.bf16.mxu0 %vm1525_vm5, %v1524_v14 }
 0x121   : > { %v432_v16 = vpop.permute.xlu1 %431  ;;  %v420_v17 = vpop.permute.xlu0 %419  ;;  %1303 = vmatprep.subr.bf16.mxu0 %v1524_v14 }
 0x122   : > { %v441_v18 = vsel %vm437_vm2, %v420_v17, %v422_v12  ;;  %v440_v19 = vsel %vm437_vm2, %v418_v61, %v420_v17  ;;  %v445_v20 = vsel %vm437_vm2, %v430_v2, %v432_v16 }
 0x123   : > { %516 = vmatprep.subr.bf16.mxu1 %v441_v18  ;;  %v465_v26 = vsel %vm457_vm3, %v445_v20, 0 }
 0x124   : > { %517 = vmatpush1.bf16.msra.mxu1 %v440_v19 }
 0x125   : > { %v436_v21 = vpop.permute.xlu1 %435  ;;  %v434_v22 = vpop.permute.xlu0 %433 }
 0x126   : > { %v446_v23 = vsel %vm437_vm2, %v432_v16, %v434_v22  ;;  %v447_v24 = vsel %vm437_vm2, %v434_v22, %v436_v21 }
 0x127   : > { %v471_v25 = vsel %vm457_vm3, %v447_v24, 0  ;;  %1263 = vmatprep.subr.msk.bf16.mxu1 %vm457_vm3, %v446_v23 }
 0x128   : > { %519 = vmatpush1.bf16.msra.mxu1 %v465_v26  ;;  %1304 = vmatpush3.bf16.msra.mxu0 %v471_v25 }
 0x12b   : > { %1264 = vmatmul.mubr.msk.bf16.vlgmr.msra.gmra.mrb[0].mxu1 %vm453_vm4, %v1452_v11  ;;  %1306 = vmatmul.mubr.msk.bf16.vlgmr.msra.gmra.mrb[4].mxu0 %vm453_vm4, %v1452_v11 }
 0x12c   : > { %889 = vmatprep.mubr.bf16.mxu1 %v1520_v0  ;;  %932 = vmatprep.mubr.bf16.mxu0 %v1520_v0 }
 0x136   : > { %v389_v30 = vpop.permute.xlu0 %388  ;;  %v394_v32 = vpop.permute.xlu1 %393 }
 0x13a   : > { %v1395_v10 = vpop.permute.xlu0 %1394 }
 0x13b   : > { %v1397_v11 = vunpack.i.h.bf16 %v1395_v10  ;;  %v1396_v12 = vunpack.i.l.bf16 %v1395_v10 }
 0x1f2   : > { %v507_v31 = vpop.f32.mrb[0].mxu0 }
 0x1f3   : > { %v509_v33 = vpop.f32.mrb[1].mxu0  ;;  %v508_v34 = vadd.f32 %v507_v31, %v389_v30 }
 0x1f4   : > { %v510_v35 = vadd.f32 %v509_v33, %v389_v30  ;;  %v511_v36 = vpop.f32.mrb[2].mxu0 }
 0x1f5   : > { %v512_v37 = vadd.f32 %v511_v36, %v394_v32  ;;  %v513_v38 = vpop.f32.mrb[3].mxu0  ;;  %v598_v40 = vmax.f32 %v508_v34, 0.0 }
 0x1f6   : > { %v514_v39 = vadd.f32 %v513_v38, %v394_v32  ;;  %v599_v42 = vmax.f32 %v510_v35, 0.0 }
 0x1f7   : > { %v602_v41 = vmax.f32 %v512_v37, 0.0 }
 0x1f8   : > { %v603_v43 = vmax.f32 %v514_v39, 0.0  ;;  %v1408_v49 = vpack.i.bf16 %v599_v42, %v598_v40 }
 0x1f9   : > { %v607_v44 = vpack.c.bf16 %v602_v41, %v598_v40  ;;  %v1398_v46 = vpack.i.bf16 %v602_v41, %v622_v27 }
 0x1fa   : > { %v608_v45 = vpack.c.bf16 %v603_v43, %v599_v42  ;;  %1409 = vrot.lane.b32.xlu1 %v1408_v49, %s1522_s19  ;;  %v1413_v60 = vpack.i.bf16 %v628_v28, %v603_v43 }
 0x1fb   : > { %609 = vst [vmem:[#allocation2 + $0x8] sm:$0xff] %v607_v44  ;;  %1399 = vrot.lane.b32.xlu0 %v1398_v46, %s1522_s19 }
 0x1fc   : > { %610 = vst [vmem:[#allocation2 + $0x10] sm:$0xff] %v608_v45 }
 0x1fe   : > { %v550_v47 = vpop.f32.mrb[0].mxu1  ;;  %v591_v48 = vpop.f32.mrb[4].mxu0  ;;  %1414 = vrot.lane.b32.xlu1 %v1413_v60, %s1522_s19 }
 0x1ff   : > { %v592_v50 = vadd.f32 %v591_v48, %v389_v30  ;;  %v551_v51 = vpop.f32.mrb[1].mxu1  ;;  %v1307_v52 = vpop.f32.mrb[5].mxu0  ;;  %1404 = vrot.lane.b32.xlu0 %v1398_v46, %s1521_s18 }
 0x200   : > { %v552_v53 = vadd.f32 %v551_v51, %v389_v30  ;;  %v553_v54 = vpop.f32.mrb[2].mxu1  ;;  %v594_v55 = vpop.f32.mrb[6].mxu0 }
 0x201   : > { %v595_v56 = vadd.f32 %v594_v55, %v394_v32  ;;  %v554_v57 = vpop.f32.mrb[3].mxu1  ;;  %v1308_v58 = vpop.f32.mrb[7].mxu0  ;;  %v601_v61 = vmax.f32 %v592_v50, 0.0 }
 0x202   : > { %v555_v59 = vadd.f32 %v554_v57, %v394_v32  ;;  %v600_v63 = vmax.f32 %v552_v53, 0.0  ;;  %1419 = vrot.lane.b32.xlu1 %v1408_v49, %s1521_s18 }
 0x203   : > { %v605_v62 = vmax.f32 %v595_v56, 0.0 }
 0x204   : > { %v604_v1 = vmax.f32 %v555_v59, 0.0  ;;  %v1428_v6 = vpack.i.bf16 %v601_v61, %v600_v63 }
 0x205   : > { %v1713_v2 = vpack.c.bf16 %v605_v62, %v601_v61 }
 0x206   : > { %v612_v5 = vpack.c.bf16 %v604_v1, %v600_v63  ;;  %1429 = vrot.lane.b32.xlu0 %v1428_v6, %s1522_s19  ;;  %1424 = vrot.lane.b32.xlu1 %v1413_v60, %s1521_s18  ;;  %v1433_v9 = vpack.i.bf16 %v605_v62, %v604_v1 }
 0x207   : > { %615 = vst [vmem:[#allocation2 + $0x28] sm:$0xff] %v1713_v2 }
 0x208   : > { %614 = vst [vmem:[#allocation2 + $0x20] sm:$0xff] %v612_v5 }
 0x20a   : > { %1439 = vrot.lane.b32.xlu0 %v1428_v6, %s1521_s18  ;;  %1434 = vrot.lane.b32.xlu1 %v1433_v9, %s1522_s19 }
 0x20e   : > { %789 = vrot.lane.b32.xlu0 %v607_v44, %s1523_s20  ;;  %1444 = vrot.lane.b32.xlu1 %v1433_v9, %s1521_s18 }
 0x212   : > { %787 = vrot.lane.b32.xlu0 %v1520_v0, %s1523_s20  ;;  %791 = vrot.lane.b32.xlu1 %v608_v45, %s1523_s20 }
 0x216   : > { %795 = vrot.lane.b32.xlu0 %v612_v5, %s1523_s20  ;;  %793 = vrot.lane.b32.xlu1 %v1520_v0, %s1523_s20 }
 0x26c   : > { %v1410_v16 = vpop.permute.xlu1 %1409 }
 0x26d   : > { %v1400_v13 = vpop.permute.xlu0 %1399  ;;  %v1411_v17 = vunpack.i.l.bf16 %v1410_v16  ;;  %v1412_v19 = vunpack.i.h.bf16 %v1410_v16 }
 0x26e   : > { %v1402_v15 = vunpack.i.h.bf16 %v1400_v13  ;;  %v1401_v32 = vunpack.i.l.bf16 %v1400_v13 }
 0x26f   : > { %v670_v20 = vsel %vm337_vm0, %v1396_v12, %v1411_v17  ;;  %v671_v25 = vsel %vm337_vm0, %v1411_v17, %v1412_v19 }
 0x270   : > { %v675_v18 = vsel %vm337_vm0, %v1397_v11, %v1402_v15  ;;  %v1415_v21 = vpop.permute.xlu1 %1414  ;;  %v672_v41 = vsel %vm337_vm0, %v1412_v19, %v1401_v32 }
 0x271   : > { %v738_v22 = vpack.c.bf16 %v675_v18, %v670_v20  ;;  %v1416_v23 = vunpack.i.l.bf16 %v1415_v21  ;;  %v1405_v24 = vpop.permute.xlu0 %1404  ;;  %v1417_v27 = vunpack.i.h.bf16 %v1415_v21 }
 0x272   : > { %v1407_v30 = vunpack.i.h.bf16 %v1405_v24  ;;  %v1406_v38 = vunpack.i.l.bf16 %v1405_v24 }
 0x273   : > { %799 = vrot.lane.b32.xlu1 %v738_v22, %s1523_s20  ;;  %v676_v26 = vsel %vm337_vm0, %v1402_v15, %v1416_v23  ;;  %v677_v37 = vsel %vm337_vm0, %v1416_v23, %v1417_v27 }
 0x274   : > { %v1420_v28 = vpop.permute.xlu1 %1419  ;;  %v739_v29 = vpack.c.bf16 %v676_v26, %v671_v25  ;;  %v740_v42 = vpack.c.bf16 %v677_v37, %v672_v41  ;;  %v752_v25 = vld [vmem:[%s1876_s4] sm:$0xff]  ;;  %v753_v26 = vld [vmem:[%s1876_s4 + $0x8] sm:$0xff] }
 0x275   : > { %v1421_v31 = vunpack.i.l.bf16 %v1420_v28  ;;  %v1422_v33 = vunpack.i.h.bf16 %v1420_v28  ;;  %v994_v28 = vld [vmem:[%s1878_s6 + $0x8] sm:$0xff] }
 0x277   : > { %801 = vrot.lane.b32.xlu1 %v739_v29, %s1523_s20  ;;  %v744_v34 = vpack.c.bf16 %v1407_v30, %v1421_v31  ;;  %v713_v43 = vsel %vm359_vm1, %v1422_v33, %v1406_v38  ;;  %v712_v52 = vsel %vm359_vm1, %v1421_v31, %v1422_v33 }
 0x278   : > { %v1425_v35 = vpop.permute.xlu1 %1424  ;;  %v1430_v36 = vpop.permute.xlu0 %1429 }
 0x279   : > { %v1427_v39 = vunpack.i.h.bf16 %v1425_v35  ;;  %v1426_v40 = vunpack.i.l.bf16 %v1425_v35  ;;  %811 = vrot.lane.b32.xlu0 %v744_v34, %s1523_s20  ;;  %v1431_v51 = vunpack.i.l.bf16 %v1430_v36  ;;  %v1432_v53 = vunpack.i.h.bf16 %v1430_v36 }
 0x27b   : > { %v717_v44 = vsel %vm359_vm1, %v1426_v40, %v1427_v39  ;;  %v716_v48 = vsel %vm359_vm1, %v1407_v30, %v1426_v40  ;;  %v673_v60 = vsel %vm337_vm0, %v1401_v32, %v1431_v51  ;;  %v674_v63 = vsel %vm337_vm0, %v1431_v51, %v1432_v53  ;;  %v1453_v40 = vld [vmem:[%s1875_s3] sm:$0xff]  }
 0x27c   : > { %v1435_v45 = vpop.permute.xlu1 %1434  ;;  %v1440_v46 = vpop.permute.xlu0 %1439  ;;  %v746_v47 = vpack.c.bf16 %v717_v44, %v713_v43  ;;  %v745_v54 = vpack.c.bf16 %v716_v48, %v712_v52 }
 0x27d   : > { %v1437_v49 = vunpack.i.h.bf16 %v1435_v45  ;;  %v1436_v50 = vunpack.i.l.bf16 %v1435_v45  ;;  %803 = vrot.lane.b32.xlu0 %v740_v42, %s1523_s20  ;;  %v1441_v61 = vunpack.i.l.bf16 %v1440_v46  ;;  %v1442_v13 = vunpack.i.h.bf16 %v1440_v46 }
 0x27e   : > { %815 = vrot.lane.b32.xlu1 %v746_v47, %s1523_s20 }
 0x27f   : > { %v678_v57 = vsel %vm337_vm0, %v1417_v27, %v1436_v50  ;;  %v679_v59 = vsel %vm337_vm0, %v1436_v50, %v1437_v49  ;;  %v714_v15 = vsel %vm359_vm1, %v1406_v38, %v1441_v61  ;;  %v715_v22 = vsel %vm359_vm1, %v1441_v61, %v1442_v13  ;;  %v993_v27 = vld [vmem:[%s1878_s6] sm:$0xff] }
 0x280   : > { %v1445_v55 = vpop.permute.xlu1 %1444  ;;  %v790_v56 = vpop.permute.xlu0 %789  ;;  %v741_v62 = vpack.c.bf16 %v678_v57, %v673_v60  ;;  %v742_v9 = vpack.c.bf16 %v679_v59, %v674_v63 }
 0x281   : > { %v1446_v58 = vunpack.i.l.bf16 %v1445_v55  ;;  %813 = vrot.lane.b32.xlu0 %v745_v54, %s1523_s20  ;;  %v1447_v1 = vunpack.i.h.bf16 %v1445_v55  ;;  %v1020_v54 = vsel %vm457_vm3, %v1627_v3, 0  ;;  %v1455_v3 = vld [vmem:[%s1877_s5] sm:$0xff]  }
 0x282   : > { %797 = vrot.lane.b32.xlu1 %v1713_v2, %s1523_s20  ;;  %v743_v2 = vpack.c.bf16 %v1437_v49, %v1432_v53 }
 0x283   : > { %v718_v12 = vsel %vm359_vm1, %v1427_v39, %v1446_v58  ;;  %v719_v19 = vsel %vm359_vm1, %v1446_v58, %v1447_v1  ;;  %v749_v24 = vpack.c.bf16 %v1447_v1, %v1442_v13 }
 0x284   : > { %v792_v5 = vpop.permute.xlu1 %791  ;;  %v788_v6 = vpop.permute.xlu0 %787  ;;  %v747_v18 = vpack.c.bf16 %v718_v12, %v714_v15  ;;  %v748_v23 = vpack.c.bf16 %v719_v19, %v715_v22 }
 0x285   : > { %v823_v10 = vsel %vm437_vm2, %v788_v6, %v790_v56  ;;  %805 = vrot.lane.b32.xlu0 %v741_v62, %s1523_s20  ;;  %v824_v11 = vsel %vm437_vm2, %v790_v56, %v792_v5 }
 0x286   : > { %857 = vmatprep.subr.bf16.mxu1 %v824_v11  ;;  %807 = vrot.lane.b32.xlu1 %v742_v9, %s1523_s20 }
 0x287   : > { %858 = vmatpush1.bf16.msra.mxu1 %v823_v10 }
 0x288   : > { %v794_v16 = vpop.permute.xlu1 %793  ;;  %v796_v17 = vpop.permute.xlu0 %795 }
 0x289   : > { %v825_v20 = vsel %vm437_vm2, %v792_v5, %v794_v16  ;;  %809 = vrot.lane.b32.xlu0 %v743_v2, %s1523_s20  ;;  %v826_v21 = vsel %vm437_vm2, %v794_v16, %v796_v17 }
 0x28a   : > { %900 = vmatprep.subr.bf16.mxu0 %v826_v21  ;;  %817 = vrot.lane.b32.xlu1 %v747_v18, %s1523_s20 }
 0x28b   : > { %901 = vmatpush1.bf16.msra.mxu0 %v825_v20 }
 0x28d   : > { %819 = vrot.lane.b32.xlu0 %v748_v23, %s1523_s20 }
 0x28e   : > { %821 = vrot.lane.b32.xlu1 %v749_v24, %s1523_s20  ;;  %s1456_s20 = scalar_lea.vmem %s1827_s17, 1024 }
 0x28f   : > { %p1457_p11 = scmp.ne.s32.totalorder %s1827_s17, %s1456_s20  ;;  %p1464_p1 = scmp.lt.s32.totalorder %s1462_s29, %s1456_s20 }
 0x291   : > { %756 = vperm.xlu0 %1391, %v752_v25   ;;  %p1458_p12 = pnand %p1457_p11, %p1607_p5  ;;  %p1465_p2 = por %p1464_p1, %p1463_p0 }
 0x292   : > { %761 = vperm.xlu1 %1392, %v753_v26  }
 0x293   : > { %p1459_p13 = pneg %p1458_p12 }
 0x295   : > { %997 = vperm.xlu0 %1391, %v993_v27   ;;  %p1466_p3 = pnand %p1465_p2, %p1459_p13 }
 0x296   : > { %1002 = vperm.xlu1 %1392, %v994_v28  }
 0x299   : > { %1087 = vperm.xlu0 %1391, %v993_v27  }
 0x29a   : > { %1092 = vperm.xlu1 %1392, %v994_v28  }
 0x2e5   : > { %v800_v29 = vpop.permute.xlu1 %799 }
 0x2e9   : > { %v802_v31 = vpop.permute.xlu1 %801 }
 0x2ea   : > { %v828_v35 = vsel %vm437_vm2, %v800_v29, %v802_v31 }
 0x2eb   : > { %v812_v30 = vpop.permute.xlu0 %811 }
 0x2ef   : > { %v804_v32 = vpop.permute.xlu0 %803 }
 0x2f0   : > { %v816_v33 = vpop.permute.xlu1 %815  ;;  %v829_v34 = vsel %vm437_vm2, %v802_v31, %v804_v32 }
 0x2f1   : > { %859 = vmatprep.subr.bf16.mxu1 %v829_v34 }
 0x2f2   : > { %860 = vmatpush1.bf16.msra.mxu1 %v828_v35 }
 0x2f3   : > { %v814_v36 = vpop.permute.xlu0 %813 }
 0x2f4   : > { %v833_v37 = vsel %vm437_vm2, %v812_v30, %v814_v36  ;;  %v798_v38 = vpop.permute.xlu1 %797  ;;  %v834_v39 = vsel %vm437_vm2, %v814_v36, %v816_v33 }
 0x2f5   : > { %861 = vmatprep.subr.bf16.mxu1 %v834_v39  ;;  %v827_v43 = vsel %vm437_vm2, %v796_v17, %v798_v38 }
 0x2f6   : > { %862 = vmatpush1.bf16.msra.mxu1 %v833_v37 }
 0x2f7   : > { %v806_v41 = vpop.permute.xlu0 %805  ;;  %1309 = vmatprep.subr.bf16.mxu1 %v1524_v14 }
 0x2f8   : > { %v808_v42 = vpop.permute.xlu1 %807  ;;  %v830_v45 = vsel %vm437_vm2, %v804_v32, %v806_v41 }
 0x2f9   : > { %1267 = vmatmul.mubr.msk.bf16.vlgmr.msra.gmra.mrb[4].mxu1 %vm853_vm6, %v1453_v40  ;;  %v831_v44 = vsel %vm437_vm2, %v806_v41, %v808_v42 }
 0x2fa   : > { %902 = vmatprep.subr.bf16.mxu0 %v831_v44  ;;  %1310 = vmatpush3.bf16.msra.mxu1 %v827_v43 }
 0x2fb   : > { %v810_v46 = vpop.permute.xlu0 %809  ;;  %903 = vmatpush1.bf16.msra.mxu0 %v830_v45  ;;  %1311 = vmatprep.subr.bf16.mxu1 %v1524_v14 }
 0x2fc   : > { %v832_v47 = vsel %vm437_vm2, %v808_v42, %v810_v46  ;;  %v818_v48 = vpop.permute.xlu1 %817  ;;  %1315 = vmatprep.mubr.msk.bf16.mxu1 %vm1525_vm5, %v1524_v14 }
 0x2fd   : > { %v835_v52 = vsel %vm437_vm2, %v816_v33, %v818_v48 }
 0x2fe   : > { %1312 = vmatpush3.bf16.msra.mxu1 %v832_v47 }
 0x2ff   : > { %v820_v49 = vpop.permute.xlu0 %819  ;;  %1313 = vmatprep.subr.bf16.mxu1 %v1524_v14  ;;  %v1109_v14 = vsel %vm457_vm3, %v1631_v7, 0 }
 0x300   : > { %v822_v50 = vpop.permute.xlu1 %821  ;;  %v836_v51 = vsel %vm437_vm2, %v818_v48, %v820_v49 }
 0x301   : > { %v837_v53 = vsel %vm437_vm2, %v820_v49, %v822_v50  ;;  %904 = vmatprep.subr.bf16.mxu0 %v836_v51 }
 0x302   : > { %905 = vmatpush1.bf16.msra.mxu0 %v835_v52  ;;  %1314 = vmatpush3.bf16.msra.mxu1 %v837_v53 }
 0x303   : > { %1273 = vmatprep.subr.msk.bf16.mxu0 %vm457_vm3, %v1629_v4  ;;  %1279 = vmatprep.subr.msk.bf16.mxu1 %vm457_vm3, %v1633_v8  ;;  %v1454_v4 = vld [vmem:[%s1877_s5] sm:$0xff]  }
 0x305   : > { %1268 = vmatmul.mubr.msk.bf16.vlgmr.msra.gmra.mrb[8].mxu0 %vm853_vm6, %v1453_v40  ;;  %1316 = vmatmul.mubr.msk.bf16.vlgmr.msra.gmra.mrb[8].mxu1 %vm853_vm6, %v1453_v40 }
 0x306   : > { %1026 = vmatpush1.bf16.msra.mxu0 %v1020_v54  ;;  %1115 = vmatpush1.bf16.msra.mxu1 %v1109_v14 }
 0x307   : > { %1057 = vmatprep.mubr.bf16.mxu0 %v1520_v0  ;;  %1146 = vmatprep.mubr.bf16.mxu1 %v1520_v0 }
 0x30d   : > { %1274 = vmatmul.mubr.msk.bf16.vlgmr.msra.gmra.mrb[12].mxu0 %vm1015_vm7, %v1454_v4  ;;  %1280 = vmatmul.mubr.msk.bf16.vlgmr.msra.gmra.mrb[12].mxu1 %vm1015_vm7, %v1455_v3 }
 0x310   : > { %v757_v57 = vpop.permute.xlu0 %756 }
 0x311   : > { %v762_v58 = vpop.permute.xlu1 %761 }
 0x314   : > { %v998_v59 = vpop.permute.xlu0 %997 }
 0x315   : > { %v1003_v0 = vpop.permute.xlu1 %1002 }
 0x318   : > { %v1088_v18 = vpop.permute.xlu0 %1087 }
 0x319   : > { %v1093_v19 = vpop.permute.xlu1 %1092 }
 0x3cc   : > { %v891_v7 = vpop.f32.mrb[4].mxu1 }
 0x3cd   : > { %v893_v8 = vpop.f32.mrb[5].mxu1  ;;  %v892_v10 = vadd.f32 %v891_v7, %v757_v57 }
 0x3ce   : > { %v895_v55 = vpop.f32.mrb[6].mxu1  ;;  %v894_v11 = vadd.f32 %v893_v8, %v757_v57 }
 0x3cf   : > { %v897_v56 = vpop.f32.mrb[7].mxu1  ;;  %v896_v12 = vadd.f32 %v895_v55, %v762_v58  ;;  %v982_v20 = vmax.f32 %v892_v10, 0.0 }
 0x3d0   : > { %v898_v13 = vadd.f32 %v897_v56, %v762_v58  ;;  %v983_v21 = vmax.f32 %v894_v11, 0.0 }
 0x3d1   : > { %v986_v22 = vmax.f32 %v896_v12, 0.0 }
 0x3d2   : > { %v987_v23 = vmax.f32 %v898_v13, 0.0 }
 0x3d8   : > { %v934_v60 = vpop.f32.mrb[8].mxu0  ;;  %v975_v61 = vpop.f32.mrb[8].mxu1 }
 0x3d9   : > { %v935_v62 = vpop.f32.mrb[9].mxu0  ;;  %v1317_v63 = vpop.f32.mrb[9].mxu1  ;;  %v976_v2 = vadd.f32 %v975_v61, %v757_v57 }
 0x3da   : > { %v937_v1 = vpop.f32.mrb[10].mxu0  ;;  %v978_v5 = vpop.f32.mrb[10].mxu1  ;;  %v936_v15 = vadd.f32 %v935_v62, %v757_v57 }
 0x3db   : > { %v938_v6 = vpop.f32.mrb[11].mxu0  ;;  %v1318_v9 = vpop.f32.mrb[11].mxu1  ;;  %v979_v16 = vadd.f32 %v978_v5, %v762_v58  ;;  %v985_v26 = vmax.f32 %v976_v2, 0.0 }
 0x3dc   : > { %v939_v17 = vadd.f32 %v938_v6, %v762_v58  ;;  %v984_v27 = vmax.f32 %v936_v15, 0.0 }
 0x3dd   : > { %v989_v32 = vmax.f32 %v979_v16, 0.0 }
 0x3de   : > { %v988_v33 = vmax.f32 %v939_v17, 0.0 }
 0x3e0   : > { %v1059_v24 = vpop.f32.mrb[12].mxu0  ;;  %v1148_v25 = vpop.f32.mrb[12].mxu1 }
 0x3e1   : > { %v1060_v28 = vadd.f32 %v1059_v24, %v998_v59  ;;  %v1149_v29 = vadd.f32 %v1148_v25, %v1088_v18  ;;  %v1061_v30 = vpop.f32.mrb[13].mxu0  ;;  %v1150_v31 = vpop.f32.mrb[13].mxu1 }
 0x3e2   : > { %v1062_v34 = vadd.f32 %v1061_v30, %v998_v59  ;;  %v1151_v35 = vadd.f32 %v1150_v31, %v1088_v18  ;;  %v1063_v36 = vpop.f32.mrb[14].mxu0  ;;  %v1152_v37 = vpop.f32.mrb[14].mxu1 }
 0x3e3   : > { %v1068_v38 = vadd.f32 %v1060_v28, %v982_v20  ;;  %v1157_v39 = vadd.f32 %v1149_v29, %v984_v27  ;;  %v1064_v40 = vadd.f32 %v1063_v36, %v1003_v0  ;;  %v1153_v41 = vadd.f32 %v1152_v37, %v1093_v19  ;;  %v1065_v42 = vpop.f32.mrb[15].mxu0  ;;  %v1154_v43 = vpop.f32.mrb[15].mxu1 }
 0x3e4   : > { %v1069_v44 = vadd.f32 %v1062_v34, %v983_v21  ;;  %v1158_v45 = vadd.f32 %v1151_v35, %v985_v26  ;;  %v1066_v46 = vadd.f32 %v1065_v42, %v1003_v0  ;;  %v1155_v47 = vadd.f32 %v1154_v43, %v1093_v19 }
 0x3e5   : > { %v1072_v48 = vmax.f32 %v1068_v38, 0.0  ;;  %v1161_v49 = vmax.f32 %v1157_v39, 0.0  ;;  %v1070_v50 = vadd.f32 %v1064_v40, %v986_v22  ;;  %v1159_v51 = vadd.f32 %v1153_v41, %v988_v33 }
 0x3e6   : > { %v1073_v52 = vmax.f32 %v1069_v44, 0.0  ;;  %v1162_v53 = vmax.f32 %v1158_v45, 0.0  ;;  %v1071_v54 = vadd.f32 %v1066_v46, %v987_v23  ;;  %v1160_v14 = vadd.f32 %v1155_v47, %v989_v32 }
 0x3e7   : > { %1076 = vst [vmem:[%s274_s16] sm:$0xff] %v1072_v48  ;;  %1281 = vst [vmem:[%s274_s16 + $0x20] sm:$0xff] %v1161_v49  ;;  %v1074_v4 = vmax.f32 %v1070_v50, 0.0  ;;  %v1163_v3 = vmax.f32 %v1159_v51, 0.0 }
 0x3e8   : > { %1077 = vst [vmem:[%s274_s16 + $0x8] sm:$0xff] %v1073_v52  ;;  %1282 = vst [vmem:[%s274_s16 + $0x28] sm:$0xff] %v1162_v53  ;;  %v1075_v7 = vmax.f32 %v1071_v54, 0.0  ;;  %v1164_v8 = vmax.f32 %v1160_v14, 0.0 }
 0x3e9   : > { %1078 = vst [vmem:[%s274_s16 + $0x10] sm:$0xff] %v1074_v4  ;;  %1283 = vst [vmem:[%s274_s16 + $0x30] sm:$0xff] %v1163_v3 }
 0x3ea   : > { %1079 = vst [vmem:[%s274_s16 + $0x18] sm:$0xff] %v1075_v7  ;;  %1284 = vst [vmem:[%s274_s16 + $0x38] sm:$0xff] %v1164_v8 }
 0x3eb   : > { %1469 = shalt.err (!%p1466_p3)
}
 0x3ec   : > { %s1470_s8 = scalar_lea.hbm %s1825_s28, 1024  ;;  %s1474_s14 = scalar_lea.hbm %s1879_s7, 2048 }
 0x3ed   : > { %p1471_p4 = scmp.ne.s32.totalorder %s1825_s28, %s1470_s8  ;;  %p1475_p9 = scmp.lt.u32.totalorder %s1825_s28, %s1879_s7 }
 0x3ee   : > { %p1476_p10 = scmp.lt.u32.totalorder %s1474_s14, %s1470_s8  ;;  %p1478_p12 = scmp.lt.u32.totalorder %s1470_s8, %s1825_s28 }
 0x3ef   : > { %p1472_p7 = pnand %p1471_p4, %p1607_p5 }
 0x3f0   : > { %p1477_p11 = por %p1476_p10, %p1475_p9 }
 0x3f1   : > { %p1473_p8 = pneg %p1472_p7 }
 0x3f2   : > { %p1479_p13 = por %p1478_p12, %p1477_p11 }
 0x3f4   : > { %p1480_p0 = pnand %p1479_p13, %p1473_p8 }
 0x3f6   : > { %1483 = shalt.err (!%p1480_p0)
}
 0x3f7   : > { %s1527_s18 = smov 256   ;;  %s1528_s19 = smov 16  }
 0x3f8   : > { %1319 = dma.vmem_to_hbm [thread:$0]  (%p1607_p5), %s1827_s17, 1024, %s1825_s28, %s1831_s21, %s1527_s18, %s1527_s18, %s1528_s19  }
 0x3f9 PF: > { %p1325_p1 = scmp.ge.s32.totalorder %s1518_s27, 2  ;;  %s1200_s20 = sand.u32 1, %s1506_s24  }
 0x3fa   : > { %s1201_s22 = scalar_lea.sflag [#allocation4], %s1200_s20 }
 0x3fb   : > { %p1322_p2 = pnand %p1325_p1, %p1611_p6 }
 0x3fd   : > { %1501 = dma.done.wait (!%p1322_p2), %s1201_s22, 1024  }
 0x3fe   : > { %1503 = vsyncadd (!%p1322_p2), %s1201_s22, 4294966272  ;;  %p17_p3 = scmp.ge.s32.totalorder %s1594_s30, 4   ;;  %s1882_s24 = smov %s1510_s25 }
 0x3ff   : > { %s1883_s25 = smov %s1514_s26  ;;  %s1884_s26 = smov %s1605_s10 }
 0x400   : > { %s1885_s27 = smov %s1594_s30  ;;  %19 = sbr.rel (!%p17_p3) target bundleno = 3 (0x3), region = 85 }
 0x407   :  { %1206 = vsyncpa [#allocation4], 1 }
 0x408   :  { %1208 = vsyncpa [#allocation4 + $0x1], 1 }

// kernel: tpu_custom_call.1
= control target key start
LH: loop header
LB: loop body
LE: loop exit
PB: predicated region body
PF: predicated region fallthrough
CT: control target
= control target key end

     0   :  { %12 = vsyncpa [#allocation4], 0  ;;  %s1872_s0 = inlined_call_operand.vmem [shape: bf16[4,8,256], index: 0, kind: input, shape index: {}]   ;;  %s1873_s1 = inlined_call_operand.vmem [shape: bf16[16,24], index: 1, kind: input, shape index: {}]   ;;  %s1874_s2 = inlined_call_operand.vmem [shape: f32[16,1], index: 2, kind: input, shape index: {}]   ;;  %s1875_s3 = inlined_call_operand.vmem [shape: bf16[16,48], index: 3, kind: input, shape index: {}]   ;;  %s1876_s4 = inlined_call_operand.vmem [shape: f32[16,1], index: 4, kind: input, shape index: {}]   ;;  %s1877_s5 = inlined_call_operand.vmem [shape: bf16[16,8], index: 5, kind: input, shape index: {}]   ;;  %s1878_s6 = inlined_call_operand.vmem [shape: f32[16,1], index: 6, kind: input, shape index: {}]   ;;  %s1879_s7 = inlined_call_operand.hbm [shape: f32[4,16,256], index: 7, kind: output, shape index: {}]  }
   0x1   :  { %14 = vsyncpa [#allocation4 + $0x1], 0  ;;  %s1569_s24 = smov 0   ;;  %s1571_s25 = smov 0  }
   0x2   :  { %s1573_s26 = smov 0   ;;  %s1575_s27 = smov 0  }
   0x3 LB: > { %s1590_s28 = sadd.s32 4294967295, %s1518_s27   ;;  %s1247_s29 = sadd.s32 4294967294, %s1518_s27   ;;  %s1518_s27 = sphi %s1575_s27, %s1885_s27   ;;  %s1514_s26 = sphi %s1573_s26, %s1884_s26   ;;  %s1510_s25 = sphi %s1571_s25, %s1883_s25   ;;  %s1506_s24 = sphi %s1569_s24, %s1882_s24  }
   0x4   : > { %s1594_s30 = sadd.s32 1, %s1518_s27   ;;  %s179_s8 = sadd.s32 1, %s1514_s26 }
   0x5   : > { %s176_s9 = ssub.s32 %s1518_s27, %s1594_s30  ;;  %p189_p0 = scmp.ne.s32.totalorder %s1514_s26, %s1510_s25 }
   0x6   : > { %p177_p1 = scmp.eq.s32.totalorder %s176_s9, 0  ;;  %p190_p2 = scmp.eq.s32.totalorder %s1590_s28, 1 }
   0x7   : > { %p195_p3 = scmp.ne.s32.totalorder %s1510_s25, %s1506_s24  ;;  %p196_p4 = scmp.eq.s32.totalorder %s1247_s29, 1 }
   0x8   : > { %s1605_s10 = scalar_select %p177_p1, %s1514_s26, %s179_s8  }
   0x9   : > { %p1607_p5 = por %p190_p2, %p189_p0  ;;  %p1611_p6 = por %p196_p4, %p195_p3 }
   0xa   : > { %p1250_p7 = scmp.ge.s32.totalorder %s1518_s27, 1  ;;  %p242_p8 = scmp.lt.s32.totalorder %s1518_s27, 3 }
   0xc   : > { %p243_p9 = pnand %p1250_p7, %p242_p8 }
   0xd   : > { %s1252_s13 = sshll.u32 (!%p243_p9), %s1590_s28, 1  ;;  %v1520_v0 = vmov (!%p243_p9), 0   ;;  %s1521_s18 = smov (!%p243_p9), 124   ;;  %vm337_vm0 = vcmask (!%p243_p9), 1031168   ;;  %vm359_vm1 = vcmask (!%p243_p9), 1014784   ;;  %v384_v57 = vld [vmem:[%s1874_s2] sm:$0xff] (!%p243_p9) }
   0xe   : > { %246 = sbr.rel (%p243_p9) target bundleno = 1017 (0x3f9), region = 48  ;;  %p276_p10 = scmp.lt.s32.totalorder (!%p243_p9), %s1252_s13, 3  ;;  %295 = vst [vmem:[#allocation2 + $0x18] sm:$0xf] (!%p243_p9), %v1520_v0  ;;  %284 = vst [vmem:[#allocation2] sm:$0xf] (!%p243_p9), %v1520_v0  ;;  %505 = vmatprep.mubr.bf16.mxu0 (!%p243_p9), %v1520_v0  ;;  %548 = vmatprep.mubr.bf16.mxu1 (!%p243_p9), %v1520_v0 }
   0xf   : > { %1391 = vset.pattern.permute.xlu0 (!%p243_p9), %v1520_v0  ;;  %1392 = vset.pattern.permute.xlu1 (!%p243_p9), %v1520_v0  ;;  %s1522_s19 = smov (!%p243_p9), 126   ;;  %s1523_s20 = smov (!%p243_p9), 4   ;;  %v385_v58 = vld [vmem:[%s1874_s2 + $0x8] sm:$0xff] (!%p243_p9)  ;;  %vm437_vm2 = vcmask (!%p243_p9), 31744   ;;  %vm457_vm3 = vcmask (!%p243_p9), 1043456   ;;  %vm453_vm4 = vcmask (!%p243_p9), 195584  }
  0x10   : > { %vm1525_vm5 = vmmov (!%p243_p9), 0   ;;  %vm853_vm6 = vcmask (!%p243_p9), 392192   ;;  %vm1015_vm7 = vcmask (!%p243_p9), 64512   ;;  %s1293_s15 = sshll.u32 (!%p243_p9), %s1590_s28, 10  ;;  %s1526_s22 = smov (!%p243_p9), [#allocation3]  }
  0x11   : > { %s1825_s28 = scalar_lea.hbm (!%p243_p9), %s1879_s7, %s1293_s15  ;;  %s1460_s23 = sshll.u32 (!%p243_p9), %s1526_s22, 4  ;;  %s1461_s23 = int_to_ptr.vmem [resolvable:$false] %s1460_s23 }
  0x12   : > { %s1462_s29 = scalar_lea.vmem (!%p243_p9), %s1461_s23, 2048 }
  0x15   : > { %s1887_s13 = smov (!%p276_p10, %s1252_s13), 3  ;;  %v310_v5 = vld [vmem:[#allocation2 + $0x18] sm:$0xf]  ;;  %v307_v6 = vld [vmem:[#allocation2] sm:$0xf] }
  0x16   : > { %s1291_s14 = sshll.u32 %s1887_s13, 3  ;;  %611 = vst [vmem:[#allocation2 + $0x18] sm:$0xff] %v1520_v0  ;;  %606 = vst [vmem:[#allocation2] sm:$0xff] %v1520_v0  ;;  %v1641_v12 = vunpack.c.l.bf16 %v310_v5  ;;  %v313_v13 = vunpack.c.l.bf16 %v307_v6  ;;  %s272_s13 = sand.u32 1, %s1510_s25  }
  0x17   : > { %s280_s17 = scalar_lea.vmem %s1872_s0, %s1291_s14  ;;  %s1818_s14 = sshll.u32 %s272_s13, 6 }
  0x18   : > { %v285_v1 = vld [vmem:[%s280_s17] sm:$0xff]  ;;  %v1257_v2 = vld [vmem:[%s280_s17 + $0x8] sm:$0xff]  ;;  %v1371_v16 = vpack.i.bf16 %v313_v13, %v1641_v12  ;;  %s274_s16 = scalar_lea.vmem [#allocation3], %s1818_s14  ;;  %s1831_s21 = scalar_lea.sflag [#allocation4], %s272_s13 }
  0x19   : > { %v1627_v3 = vcombine.low %v285_v1, %v285_v1  ;;  %v1629_v4 = vcombine.high %v285_v1, %v285_v1  ;;  %v1631_v7 = vcombine.low %v1257_v2, %v1257_v2  ;;  %v1633_v8 = vcombine.high %v1257_v2, %v1257_v2  ;;  %s1185_s17 = sshll.u32 %s274_s16, 4  ;;  %s1827_s17 = int_to_ptr.vmem [resolvable:$true] %s1185_s17 }
  0x1a   : > { %p1463_p0 = scmp.lt.s32.totalorder %s1827_s17, %s1461_s23 }
  0x1b   : > { %293 = vst [vmem:[#allocation2 + $0x8] sm:$0xf] %v1627_v3  ;;  %294 = vst [vmem:[#allocation2 + $0x10] sm:$0xf] %v1629_v4 }
  0x1c   : > { %305 = vst [vmem:[#allocation2 + $0x20] sm:$0xf] %v1631_v7  ;;  %306 = vst [vmem:[#allocation2 + $0x28] sm:$0xf] %v1633_v8 }
  0x22   : > { %v308_v9 = vld [vmem:[#allocation2 + $0x8] ss:$8 sps:$4 sm:$0xff]  }
  0x23   : > { %v314_v10 = vunpack.c.l.bf16 %v308_v9  ;;  %v315_v11 = vunpack.c.h.bf16 %v308_v9  ;;  %v311_v14 = vld [vmem:[#allocation2 + $0x20] ss:$8 sps:$4 sm:$0xff]  }
  0x24   : > { %v317_v17 = vunpack.c.l.bf16 %v311_v14  ;;  %v318_v18 = vunpack.c.h.bf16 %v311_v14  ;;  %v1524_v14 = vmov 0.0  }
  0x25   : > { %v1376_v15 = vpack.i.bf16 %v315_v11, %v314_v10 }
  0x26   : > { %v1386_v19 = vpack.i.bf16 %v318_v18, %v317_v17 }
  0x27   : > { %1377 = vrot.lane.b32.xlu1 %v1376_v15, %s1521_s18  ;;  %1367 = vrot.lane.b32.xlu0 %v1376_v15, %s1522_s19 }
  0x2b   : > { %353 = vrot.lane.b32.xlu1 %v1641_v12, %s1521_s18  ;;  %1372 = vrot.lane.b32.xlu0 %v1371_v16, %s1522_s19 }
  0x2f   : > { %1387 = vrot.lane.b32.xlu1 %v1386_v19, %s1521_s18  ;;  %1382 = vrot.lane.b32.xlu0 %v1386_v19, %s1522_s19 }
  0x99   : > { %v1378_v20 = vpop.permute.xlu1 %1377  ;;  %v1368_v21 = vpop.permute.xlu0 %1367 }
  0x9a   : > { %v1379_v22 = vunpack.i.l.bf16 %v1378_v20  ;;  %v1370_v23 = vunpack.i.h.bf16 %v1368_v21  ;;  %v1369_v24 = vunpack.i.l.bf16 %v1368_v21  ;;  %v1380_v30 = vunpack.i.h.bf16 %v1378_v20 }
  0x9c   : > { %v376_v25 = vpack.c.bf16 %v1379_v22, %v1379_v22  ;;  %v339_v26 = vsel %vm337_vm0, %v1369_v24, %v1370_v23  ;;  %v360_v41 = vsel %vm359_vm1, %v1379_v22, %v1380_v30 }
  0x9d   : > { %v354_v27 = vpop.permute.xlu1 %353  ;;  %v1373_v28 = vpop.permute.xlu0 %1372  ;;  %v371_v29 = vpack.c.bf16 %v339_v26, %v314_v10  ;;  %v377_v45 = vpack.c.bf16 %v360_v41, %v360_v41 }
  0x9e   : > { %v1375_v31 = vunpack.i.h.bf16 %v1373_v28  ;;  %v1374_v32 = vunpack.i.l.bf16 %v1373_v28  ;;  %425 = vrot.lane.b32.xlu1 %v376_v25, %s1523_s20  ;;  %v361_v38 = vsel %vm359_vm1, %v1380_v30, %v354_v27  ;;  %v628_v28 = vunpack.c.h.bf16 %v1520_v0 }
  0x9f   : > { %415 = vrot.lane.b32.xlu0 %v371_v29, %s1523_s20  ;;  %v378_v44 = vpack.c.bf16 %v361_v38, %v361_v38 }
  0xa0   : > { %v340_v33 = vsel %vm337_vm0, %v1370_v23, %v1374_v32  ;;  %v338_v34 = vsel %vm337_vm0, %v1375_v31, %v1369_v24 }
  0xa1   : > { %v1383_v35 = vpop.permute.xlu0 %1382  ;;  %v372_v36 = vpack.c.bf16 %v340_v33, %v315_v11  ;;  %v370_v37 = vpack.c.bf16 %v338_v34, %v313_v13  ;;  %v1388_v42 = vpop.permute.xlu1 %1387  ;;  %v1452_v11 = vld [vmem:[%s1873_s1] sm:$0xff]  }
  0xa2   : > { %v1385_v39 = vunpack.i.h.bf16 %v1383_v35  ;;  %v1384_v40 = vunpack.i.l.bf16 %v1383_v35  ;;  %v1389_v46 = vunpack.i.l.bf16 %v1388_v42  ;;  %v1390_v49 = vunpack.i.h.bf16 %v1388_v42 }
  0xa3   : > { %417 = vrot.lane.b32.xlu1 %v372_v36, %s1523_s20  ;;  %413 = vrot.lane.b32.xlu0 %v370_v37, %s1523_s20 }
  0xa4   : > { %v342_v43 = vsel %vm337_vm0, %v1384_v40, %v1385_v39  ;;  %v375_v47 = vpack.c.bf16 %v1385_v39, %v318_v18  ;;  %v362_v50 = vsel %vm359_vm1, %v354_v27, %v1389_v46  ;;  %v341_v51 = vsel %vm337_vm0, %v1374_v32, %v1384_v40 }
  0xa5   : > { %v374_v48 = vpack.c.bf16 %v342_v43, %v317_v17  ;;  %v363_v52 = vsel %vm359_vm1, %v1389_v46, %v1390_v49  ;;  %v379_v53 = vpack.c.bf16 %v362_v50, %v362_v50  ;;  %v373_v54 = vpack.c.bf16 %v341_v51, %v1641_v12 }
  0xa6   : > { %v381_v55 = vpack.c.bf16 %v1390_v49, %v1390_v49  ;;  %v380_v56 = vpack.c.bf16 %v363_v52, %v363_v52  ;;  %v622_v27 = vunpack.c.l.bf16 %v1520_v0 }
  0xa7   : > { %429 = vrot.lane.b32.xlu1 %v378_v44, %s1523_s20  ;;  %427 = vrot.lane.b32.xlu0 %v377_v45, %s1523_s20 }
  0xa8   : > { %v1393_v29 = vpack.i.bf16 %v628_v28, %v622_v27 }
  0xab   : > { %421 = vrot.lane.b32.xlu1 %v374_v48, %s1523_s20  ;;  %423 = vrot.lane.b32.xlu0 %v375_v47, %s1523_s20 }
  0xaf   : > { %431 = vrot.lane.b32.xlu1 %v379_v53, %s1523_s20  ;;  %419 = vrot.lane.b32.xlu0 %v373_v54, %s1523_s20 }
  0xb3   : > { %435 = vrot.lane.b32.xlu1 %v381_v55, %s1523_s20  ;;  %433 = vrot.lane.b32.xlu0 %v380_v56, %s1523_s20 }
  0xb7   : > { %388 = vperm.xlu0 %1391, %v384_v57   ;;  %393 = vperm.xlu1 %1392, %v385_v58  }
  0xbb   : > { %1394 = vrot.lane.b32.xlu0 %v1393_v29, %s1522_s19 }
 0x110   : > { %v426_v59 = vpop.permute.xlu1 %425 }
 0x111   : > { %v416_v60 = vpop.permute.xlu0 %415 }
 0x115   : > { %v418_v61 = vpop.permute.xlu1 %417  ;;  %v414_v62 = vpop.permute.xlu0 %413 }
 0x116   : > { %v439_v63 = vsel %vm437_vm2, %v416_v60, %v418_v61  ;;  %v438_v1 = vsel %vm437_vm2, %v414_v62, %v416_v60 }
 0x117   : > { %473 = vmatprep.subr.bf16.mxu0 %v439_v63 }
 0x118   : > { %474 = vmatpush1.bf16.msra.mxu0 %v438_v1 }
 0x119   : > { %v430_v2 = vpop.permute.xlu1 %429  ;;  %v428_v5 = vpop.permute.xlu0 %427 }
 0x11a   : > { %v443_v6 = vsel %vm437_vm2, %v426_v59, %v428_v5  ;;  %v444_v9 = vsel %vm437_vm2, %v428_v5, %v430_v2 }
 0x11b   : > { %1261 = vmatprep.subr.msk.bf16.mxu0 %vm457_vm3, %v444_v9  ;;  %v459_v10 = vsel %vm457_vm3, %v443_v6, 0 }
 0x11c   : > { %476 = vmatpush1.bf16.msra.mxu0 %v459_v10 }
 0x11d   : > { %v422_v12 = vpop.permute.xlu1 %421  ;;  %v424_v13 = vpop.permute.xlu0 %423  ;;  %1301 = vmatprep.subr.bf16.mxu0 %v1524_v14 }
 0x11e   : > { %v442_v15 = vsel %vm437_vm2, %v422_v12, %v424_v13 }
 0x11f   : > { %1262 = vmatmul.mubr.msk.bf16.vlgmr.msra.gmra.mrb[0].mxu0 %vm453_vm4, %v1452_v11 }
 0x120   : > { %1302 = vmatpush3.bf16.msra.mxu0 %v442_v15  ;;  %1305 = vmatprep.mubr.msk.bf16.mxu0 %vm1525_vm5, %v1524_v14 }
 0x121   : > { %v432_v16 = vpop.permute.xlu1 %431  ;;  %v420_v17 = vpop.permute.xlu0 %419  ;;  %1303 = vmatprep.subr.bf16.mxu0 %v1524_v14 }
 0x122   : > { %v441_v18 = vsel %vm437_vm2, %v420_v17, %v422_v12  ;;  %v440_v19 = vsel %vm437_vm2, %v418_v61, %v420_v17  ;;  %v445_v20 = vsel %vm437_vm2, %v430_v2, %v432_v16 }
 0x123   : > { %516 = vmatprep.subr.bf16.mxu1 %v441_v18  ;;  %v465_v26 = vsel %vm457_vm3, %v445_v20, 0 }
 0x124   : > { %517 = vmatpush1.bf16.msra.mxu1 %v440_v19 }
 0x125   : > { %v436_v21 = vpop.permute.xlu1 %435  ;;  %v434_v22 = vpop.permute.xlu0 %433 }
 0x126   : > { %v446_v23 = vsel %vm437_vm2, %v432_v16, %v434_v22  ;;  %v447_v24 = vsel %vm437_vm2, %v434_v22, %v436_v21 }
 0x127   : > { %v471_v25 = vsel %vm457_vm3, %v447_v24, 0  ;;  %1263 = vmatprep.subr.msk.bf16.mxu1 %vm457_vm3, %v446_v23 }
 0x128   : > { %519 = vmatpush1.bf16.msra.mxu1 %v465_v26  ;;  %1304 = vmatpush3.bf16.msra.mxu0 %v471_v25 }
 0x12b   : > { %1264 = vmatmul.mubr.msk.bf16.vlgmr.msra.gmra.mrb[0].mxu1 %vm453_vm4, %v1452_v11  ;;  %1306 = vmatmul.mubr.msk.bf16.vlgmr.msra.gmra.mrb[4].mxu0 %vm453_vm4, %v1452_v11 }
 0x12c   : > { %889 = vmatprep.mubr.bf16.mxu1 %v1520_v0  ;;  %932 = vmatprep.mubr.bf16.mxu0 %v1520_v0 }
 0x136   : > { %v389_v30 = vpop.permute.xlu0 %388  ;;  %v394_v32 = vpop.permute.xlu1 %393 }
 0x13a   : > { %v1395_v10 = vpop.permute.xlu0 %1394 }
 0x13b   : > { %v1397_v11 = vunpack.i.h.bf16 %v1395_v10  ;;  %v1396_v12 = vunpack.i.l.bf16 %v1395_v10 }
 0x1f2   : > { %v507_v31 = vpop.f32.mrb[0].mxu0 }
 0x1f3   : > { %v509_v33 = vpop.f32.mrb[1].mxu0  ;;  %v508_v34 = vadd.f32 %v507_v31, %v389_v30 }
 0x1f4   : > { %v510_v35 = vadd.f32 %v509_v33, %v389_v30  ;;  %v511_v36 = vpop.f32.mrb[2].mxu0 }
 0x1f5   : > { %v512_v37 = vadd.f32 %v511_v36, %v394_v32  ;;  %v513_v38 = vpop.f32.mrb[3].mxu0  ;;  %v598_v40 = vmax.f32 %v508_v34, 0.0 }
 0x1f6   : > { %v514_v39 = vadd.f32 %v513_v38, %v394_v32  ;;  %v599_v42 = vmax.f32 %v510_v35, 0.0 }
 0x1f7   : > { %v602_v41 = vmax.f32 %v512_v37, 0.0 }
 0x1f8   : > { %v603_v43 = vmax.f32 %v514_v39, 0.0  ;;  %v1408_v49 = vpack.i.bf16 %v599_v42, %v598_v40 }
 0x1f9   : > { %v607_v44 = vpack.c.bf16 %v602_v41, %v598_v40  ;;  %v1398_v46 = vpack.i.bf16 %v602_v41, %v622_v27 }
 0x1fa   : > { %v608_v45 = vpack.c.bf16 %v603_v43, %v599_v42  ;;  %1409 = vrot.lane.b32.xlu1 %v1408_v49, %s1522_s19  ;;  %v1413_v60 = vpack.i.bf16 %v628_v28, %v603_v43 }
 0x1fb   : > { %609 = vst [vmem:[#allocation2 + $0x8] sm:$0xff] %v607_v44  ;;  %1399 = vrot.lane.b32.xlu0 %v1398_v46, %s1522_s19 }
 0x1fc   : > { %610 = vst [vmem:[#allocation2 + $0x10] sm:$0xff] %v608_v45 }
 0x1fe   : > { %v550_v47 = vpop.f32.mrb[0].mxu1  ;;  %v591_v48 = vpop.f32.mrb[4].mxu0  ;;  %1414 = vrot.lane.b32.xlu1 %v1413_v60, %s1522_s19 }
 0x1ff   : > { %v592_v50 = vadd.f32 %v591_v48, %v389_v30  ;;  %v551_v51 = vpop.f32.mrb[1].mxu1  ;;  %v1307_v52 = vpop.f32.mrb[5].mxu0  ;;  %1404 = vrot.lane.b32.xlu0 %v1398_v46, %s1521_s18 }
 0x200   : > { %v552_v53 = vadd.f32 %v551_v51, %v389_v30  ;;  %v553_v54 = vpop.f32.mrb[2].mxu1  ;;  %v594_v55 = vpop.f32.mrb[6].mxu0 }
 0x201   : > { %v595_v56 = vadd.f32 %v594_v55, %v394_v32  ;;  %v554_v57 = vpop.f32.mrb[3].mxu1  ;;  %v1308_v58 = vpop.f32.mrb[7].mxu0  ;;  %v601_v61 = vmax.f32 %v592_v50, 0.0 }
 0x202   : > { %v555_v59 = vadd.f32 %v554_v57, %v394_v32  ;;  %v600_v63 = vmax.f32 %v552_v53, 0.0  ;;  %1419 = vrot.lane.b32.xlu1 %v1408_v49, %s1521_s18 }
 0x203   : > { %v605_v62 = vmax.f32 %v595_v56, 0.0 }
 0x204   : > { %v604_v1 = vmax.f32 %v555_v59, 0.0  ;;  %v1428_v6 = vpack.i.bf16 %v601_v61, %v600_v63 }
 0x205   : > { %v1713_v2 = vpack.c.bf16 %v605_v62, %v601_v61 }
 0x206   : > { %v612_v5 = vpack.c.bf16 %v604_v1, %v600_v63  ;;  %1429 = vrot.lane.b32.xlu0 %v1428_v6, %s1522_s19  ;;  %1424 = vrot.lane.b32.xlu1 %v1413_v60, %s1521_s18  ;;  %v1433_v9 = vpack.i.bf16 %v605_v62, %v604_v1 }
 0x207   : > { %615 = vst [vmem:[#allocation2 + $0x28] sm:$0xff] %v1713_v2 }
 0x208   : > { %614 = vst [vmem:[#allocation2 + $0x20] sm:$0xff] %v612_v5 }
 0x20a   : > { %1439 = vrot.lane.b32.xlu0 %v1428_v6, %s1521_s18  ;;  %1434 = vrot.lane.b32.xlu1 %v1433_v9, %s1522_s19 }
 0x20e   : > { %789 = vrot.lane.b32.xlu0 %v607_v44, %s1523_s20  ;;  %1444 = vrot.lane.b32.xlu1 %v1433_v9, %s1521_s18 }
 0x212   : > { %787 = vrot.lane.b32.xlu0 %v1520_v0, %s1523_s20  ;;  %791 = vrot.lane.b32.xlu1 %v608_v45, %s1523_s20 }
 0x216   : > { %795 = vrot.lane.b32.xlu0 %v612_v5, %s1523_s20  ;;  %793 = vrot.lane.b32.xlu1 %v1520_v0, %s1523_s20 }
 0x26c   : > { %v1410_v16 = vpop.permute.xlu1 %1409 }
 0x26d   : > { %v1400_v13 = vpop.permute.xlu0 %1399  ;;  %v1411_v17 = vunpack.i.l.bf16 %v1410_v16  ;;  %v1412_v19 = vunpack.i.h.bf16 %v1410_v16 }
 0x26e   : > { %v1402_v15 = vunpack.i.h.bf16 %v1400_v13  ;;  %v1401_v32 = vunpack.i.l.bf16 %v1400_v13 }
 0x26f   : > { %v670_v20 = vsel %vm337_vm0, %v1396_v12, %v1411_v17  ;;  %v671_v25 = vsel %vm337_vm0, %v1411_v17, %v1412_v19 }
 0x270   : > { %v675_v18 = vsel %vm337_vm0, %v1397_v11, %v1402_v15  ;;  %v1415_v21 = vpop.permute.xlu1 %1414  ;;  %v672_v41 = vsel %vm337_vm0, %v1412_v19, %v1401_v32 }
 0x271   : > { %v738_v22 = vpack.c.bf16 %v675_v18, %v670_v20  ;;  %v1416_v23 = vunpack.i.l.bf16 %v1415_v21  ;;  %v1405_v24 = vpop.permute.xlu0 %1404  ;;  %v1417_v27 = vunpack.i.h.bf16 %v1415_v21 }
 0x272   : > { %v1407_v30 = vunpack.i.h.bf16 %v1405_v24  ;;  %v1406_v38 = vunpack.i.l.bf16 %v1405_v24 }
 0x273   : > { %799 = vrot.lane.b32.xlu1 %v738_v22, %s1523_s20  ;;  %v676_v26 = vsel %vm337_vm0, %v1402_v15, %v1416_v23  ;;  %v677_v37 = vsel %vm337_vm0, %v1416_v23, %v1417_v27 }
 0x274   : > { %v1420_v28 = vpop.permute.xlu1 %1419  ;;  %v739_v29 = vpack.c.bf16 %v676_v26, %v671_v25  ;;  %v740_v42 = vpack.c.bf16 %v677_v37, %v672_v41  ;;  %v752_v25 = vld [vmem:[%s1876_s4] sm:$0xff]  ;;  %v753_v26 = vld [vmem:[%s1876_s4 + $0x8] sm:$0xff] }
 0x275   : > { %v1421_v31 = vunpack.i.l.bf16 %v1420_v28  ;;  %v1422_v33 = vunpack.i.h.bf16 %v1420_v28  ;;  %v994_v28 = vld [vmem:[%s1878_s6 + $0x8] sm:$0xff] }
 0x277   : > { %801 = vrot.lane.b32.xlu1 %v739_v29, %s1523_s20  ;;  %v744_v34 = vpack.c.bf16 %v1407_v30, %v1421_v31  ;;  %v713_v43 = vsel %vm359_vm1, %v1422_v33, %v1406_v38  ;;  %v712_v52 = vsel %vm359_vm1, %v1421_v31, %v1422_v33 }
 0x278   : > { %v1425_v35 = vpop.permute.xlu1 %1424  ;;  %v1430_v36 = vpop.permute.xlu0 %1429 }
 0x279   : > { %v1427_v39 = vunpack.i.h.bf16 %v1425_v35  ;;  %v1426_v40 = vunpack.i.l.bf16 %v1425_v35  ;;  %811 = vrot.lane.b32.xlu0 %v744_v34, %s1523_s20  ;;  %v1431_v51 = vunpack.i.l.bf16 %v1430_v36  ;;  %v1432_v53 = vunpack.i.h.bf16 %v1430_v36 }
 0x27b   : > { %v717_v44 = vsel %vm359_vm1, %v1426_v40, %v1427_v39  ;;  %v716_v48 = vsel %vm359_vm1, %v1407_v30, %v1426_v40  ;;  %v673_v60 = vsel %vm337_vm0, %v1401_v32, %v1431_v51  ;;  %v674_v63 = vsel %vm337_vm0, %v1431_v51, %v1432_v53  ;;  %v1453_v40 = vld [vmem:[%s1875_s3] sm:$0xff]  }
 0x27c   : > { %v1435_v45 = vpop.permute.xlu1 %1434  ;;  %v1440_v46 = vpop.permute.xlu0 %1439  ;;  %v746_v47 = vpack.c.bf16 %v717_v44, %v713_v43  ;;  %v745_v54 = vpack.c.bf16 %v716_v48, %v712_v52 }
 0x27d   : > { %v1437_v49 = vunpack.i.h.bf16 %v1435_v45  ;;  %v1436_v50 = vunpack.i.l.bf16 %v1435_v45  ;;  %803 = vrot.lane.b32.xlu0 %v740_v42, %s1523_s20  ;;  %v1441_v61 = vunpack.i.l.bf16 %v1440_v46  ;;  %v1442_v13 = vunpack.i.h.bf16 %v1440_v46 }
 0x27e   : > { %815 = vrot.lane.b32.xlu1 %v746_v47, %s1523_s20 }
 0x27f   : > { %v678_v57 = vsel %vm337_vm0, %v1417_v27, %v1436_v50  ;;  %v679_v59 = vsel %vm337_vm0, %v1436_v50, %v1437_v49  ;;  %v714_v15 = vsel %vm359_vm1, %v1406_v38, %v1441_v61  ;;  %v715_v22 = vsel %vm359_vm1, %v1441_v61, %v1442_v13  ;;  %v993_v27 = vld [vmem:[%s1878_s6] sm:$0xff] }
 0x280   : > { %v1445_v55 = vpop.permute.xlu1 %1444  ;;  %v790_v56 = vpop.permute.xlu0 %789  ;;  %v741_v62 = vpack.c.bf16 %v678_v57, %v673_v60  ;;  %v742_v9 = vpack.c.bf16 %v679_v59, %v674_v63 }
 0x281   : > { %v1446_v58 = vunpack.i.l.bf16 %v1445_v55  ;;  %813 = vrot.lane.b32.xlu0 %v745_v54, %s1523_s20  ;;  %v1447_v1 = vunpack.i.h.bf16 %v1445_v55  ;;  %v1020_v54 = vsel %vm457_vm3, %v1627_v3, 0  ;;  %v1455_v3 = vld [vmem:[%s1877_s5] sm:$0xff]  }
 0x282   : > { %797 = vrot.lane.b32.xlu1 %v1713_v2, %s1523_s20  ;;  %v743_v2 = vpack.c.bf16 %v1437_v49, %v1432_v53 }
 0x283   : > { %v718_v12 = vsel %vm359_vm1, %v1427_v39, %v1446_v58  ;;  %v719_v19 = vsel %vm359_vm1, %v1446_v58, %v1447_v1  ;;  %v749_v24 = vpack.c.bf16 %v1447_v1, %v1442_v13 }
 0x284   : > { %v792_v5 = vpop.permute.xlu1 %791  ;;  %v788_v6 = vpop.permute.xlu0 %787  ;;  %v747_v18 = vpack.c.bf16 %v718_v12, %v714_v15  ;;  %v748_v23 = vpack.c.bf16 %v719_v19, %v715_v22 }
 0x285   : > { %v823_v10 = vsel %vm437_vm2, %v788_v6, %v790_v56  ;;  %805 = vrot.lane.b32.xlu0 %v741_v62, %s1523_s20  ;;  %v824_v11 = vsel %vm437_vm2, %v790_v56, %v792_v5 }
 0x286   : > { %857 = vmatprep.subr.bf16.mxu1 %v824_v11  ;;  %807 = vrot.lane.b32.xlu1 %v742_v9, %s1523_s20 }
 0x287   : > { %858 = vmatpush1.bf16.msra.mxu1 %v823_v10 }
 0x288   : > { %v794_v16 = vpop.permute.xlu1 %793  ;;  %v796_v17 = vpop.permute.xlu0 %795 }
 0x289   : > { %v825_v20 = vsel %vm437_vm2, %v792_v5, %v794_v16  ;;  %809 = vrot.lane.b32.xlu0 %v743_v2, %s1523_s20  ;;  %v826_v21 = vsel %vm437_vm2, %v794_v16, %v796_v17 }
 0x28a   : > { %900 = vmatprep.subr.bf16.mxu0 %v826_v21  ;;  %817 = vrot.lane.b32.xlu1 %v747_v18, %s1523_s20 }
 0x28b   : > { %901 = vmatpush1.bf16.msra.mxu0 %v825_v20 }
 0x28d   : > { %819 = vrot.lane.b32.xlu0 %v748_v23, %s1523_s20 }
 0x28e   : > { %821 = vrot.lane.b32.xlu1 %v749_v24, %s1523_s20  ;;  %s1456_s20 = scalar_lea.vmem %s1827_s17, 1024 }
 0x28f   : > { %p1457_p11 = scmp.ne.s32.totalorder %s1827_s17, %s1456_s20  ;;  %p1464_p1 = scmp.lt.s32.totalorder %s1462_s29, %s1456_s20 }
 0x291   : > { %756 = vperm.xlu0 %1391, %v752_v25   ;;  %p1458_p12 = pnand %p1457_p11, %p1607_p5  ;;  %p1465_p2 = por %p1464_p1, %p1463_p0 }
 0x292   : > { %761 = vperm.xlu1 %1392, %v753_v26  }
 0x293   : > { %p1459_p13 = pneg %p1458_p12 }
 0x295   : > { %997 = vperm.xlu0 %1391, %v993_v27   ;;  %p1466_p3 = pnand %p1465_p2, %p1459_p13 }
 0x296   : > { %1002 = vperm.xlu1 %1392, %v994_v28  }
 0x299   : > { %1087 = vperm.xlu0 %1391, %v993_v27  }
 0x29a   : > { %1092 = vperm.xlu1 %1392, %v994_v28  }
 0x2e5   : > { %v800_v29 = vpop.permute.xlu1 %799 }
 0x2e9   : > { %v802_v31 = vpop.permute.xlu1 %801 }
 0x2ea   : > { %v828_v35 = vsel %vm437_vm2, %v800_v29, %v802_v31 }
 0x2eb   : > { %v812_v30 = vpop.permute.xlu0 %811 }
 0x2ef   : > { %v804_v32 = vpop.permute.xlu0 %803 }
 0x2f0   : > { %v816_v33 = vpop.permute.xlu1 %815  ;;  %v829_v34 = vsel %vm437_vm2, %v802_v31, %v804_v32 }
 0x2f1   : > { %859 = vmatprep.subr.bf16.mxu1 %v829_v34 }
 0x2f2   : > { %860 = vmatpush1.bf16.msra.mxu1 %v828_v35 }
 0x2f3   : > { %v814_v36 = vpop.permute.xlu0 %813 }
 0x2f4   : > { %v833_v37 = vsel %vm437_vm2, %v812_v30, %v814_v36  ;;  %v798_v38 = vpop.permute.xlu1 %797  ;;  %v834_v39 = vsel %vm437_vm2, %v814_v36, %v816_v33 }
 0x2f5   : > { %861 = vmatprep.subr.bf16.mxu1 %v834_v39  ;;  %v827_v43 = vsel %vm437_vm2, %v796_v17, %v798_v38 }
 0x2f6   : > { %862 = vmatpush1.bf16.msra.mxu1 %v833_v37 }
 0x2f7   : > { %v806_v41 = vpop.permute.xlu0 %805  ;;  %1309 = vmatprep.subr.bf16.mxu1 %v1524_v14 }
 0x2f8   : > { %v808_v42 = vpop.permute.xlu1 %807  ;;  %v830_v45 = vsel %vm437_vm2, %v804_v32, %v806_v41 }
 0x2f9   : > { %1267 = vmatmul.mubr.msk.bf16.vlgmr.msra.gmra.mrb[4].mxu1 %vm853_vm6, %v1453_v40  ;;  %v831_v44 = vsel %vm437_vm2, %v806_v41, %v808_v42 }
 0x2fa   : > { %902 = vmatprep.subr.bf16.mxu0 %v831_v44  ;;  %1310 = vmatpush3.bf16.msra.mxu1 %v827_v43 }
 0x2fb   : > { %v810_v46 = vpop.permute.xlu0 %809  ;;  %903 = vmatpush1.bf16.msra.mxu0 %v830_v45  ;;  %1311 = vmatprep.subr.bf16.mxu1 %v1524_v14 }
 0x2fc   : > { %v832_v47 = vsel %vm437_vm2, %v808_v42, %v810_v46  ;;  %v818_v48 = vpop.permute.xlu1 %817  ;;  %1315 = vmatprep.mubr.msk.bf16.mxu1 %vm1525_vm5, %v1524_v14 }
 0x2fd   : > { %v835_v52 = vsel %vm437_vm2, %v816_v33, %v818_v48 }
 0x2fe   : > { %1312 = vmatpush3.bf16.msra.mxu1 %v832_v47 }
 0x2ff   : > { %v820_v49 = vpop.permute.xlu0 %819  ;;  %1313 = vmatprep.subr.bf16.mxu1 %v1524_v14  ;;  %v1109_v14 = vsel %vm457_vm3, %v1631_v7, 0 }
 0x300   : > { %v822_v50 = vpop.permute.xlu1 %821  ;;  %v836_v51 = vsel %vm437_vm2, %v818_v48, %v820_v49 }
 0x301   : > { %v837_v53 = vsel %vm437_vm2, %v820_v49, %v822_v50  ;;  %904 = vmatprep.subr.bf16.mxu0 %v836_v51 }
 0x302   : > { %905 = vmatpush1.bf16.msra.mxu0 %v835_v52  ;;  %1314 = vmatpush3.bf16.msra.mxu1 %v837_v53 }
 0x303   : > { %1273 = vmatprep.subr.msk.bf16.mxu0 %vm457_vm3, %v1629_v4  ;;  %1279 = vmatprep.subr.msk.bf16.mxu1 %vm457_vm3, %v1633_v8  ;;  %v1454_v4 = vld [vmem:[%s1877_s5] sm:$0xff]  }
 0x305   : > { %1268 = vmatmul.mubr.msk.bf16.vlgmr.msra.gmra.mrb[8].mxu0 %vm853_vm6, %v1453_v40  ;;  %1316 = vmatmul.mubr.msk.bf16.vlgmr.msra.gmra.mrb[8].mxu1 %vm853_vm6, %v1453_v40 }
 0x306   : > { %1026 = vmatpush1.bf16.msra.mxu0 %v1020_v54  ;;  %1115 = vmatpush1.bf16.msra.mxu1 %v1109_v14 }
 0x307   : > { %1057 = vmatprep.mubr.bf16.mxu0 %v1520_v0  ;;  %1146 = vmatprep.mubr.bf16.mxu1 %v1520_v0 }
 0x30d   : > { %1274 = vmatmul.mubr.msk.bf16.vlgmr.msra.gmra.mrb[12].mxu0 %vm1015_vm7, %v1454_v4  ;;  %1280 = vmatmul.mubr.msk.bf16.vlgmr.msra.gmra.mrb[12].mxu1 %vm1015_vm7, %v1455_v3 }
 0x310   : > { %v757_v57 = vpop.permute.xlu0 %756 }
 0x311   : > { %v762_v58 = vpop.permute.xlu1 %761 }
 0x314   : > { %v998_v59 = vpop.permute.xlu0 %997 }
 0x315   : > { %v1003_v0 = vpop.permute.xlu1 %1002 }
 0x318   : > { %v1088_v18 = vpop.permute.xlu0 %1087 }
 0x319   : > { %v1093_v19 = vpop.permute.xlu1 %1092 }
 0x3cc   : > { %v891_v7 = vpop.f32.mrb[4].mxu1 }
 0x3cd   : > { %v893_v8 = vpop.f32.mrb[5].mxu1  ;;  %v892_v10 = vadd.f32 %v891_v7, %v757_v57 }
 0x3ce   : > { %v895_v55 = vpop.f32.mrb[6].mxu1  ;;  %v894_v11 = vadd.f32 %v893_v8, %v757_v57 }
 0x3cf   : > { %v897_v56 = vpop.f32.mrb[7].mxu1  ;;  %v896_v12 = vadd.f32 %v895_v55, %v762_v58  ;;  %v982_v20 = vmax.f32 %v892_v10, 0.0 }
 0x3d0   : > { %v898_v13 = vadd.f32 %v897_v56, %v762_v58  ;;  %v983_v21 = vmax.f32 %v894_v11, 0.0 }
 0x3d1   : > { %v986_v22 = vmax.f32 %v896_v12, 0.0 }
 0x3d2   : > { %v987_v23 = vmax.f32 %v898_v13, 0.0 }
 0x3d8   : > { %v934_v60 = vpop.f32.mrb[8].mxu0  ;;  %v975_v61 = vpop.f32.mrb[8].mxu1 }
 0x3d9   : > { %v935_v62 = vpop.f32.mrb[9].mxu0  ;;  %v1317_v63 = vpop.f32.mrb[9].mxu1  ;;  %v976_v2 = vadd.f32 %v975_v61, %v757_v57 }
 0x3da   : > { %v937_v1 = vpop.f32.mrb[10].mxu0  ;;  %v978_v5 = vpop.f32.mrb[10].mxu1  ;;  %v936_v15 = vadd.f32 %v935_v62, %v757_v57 }
 0x3db   : > { %v938_v6 = vpop.f32.mrb[11].mxu0  ;;  %v1318_v9 = vpop.f32.mrb[11].mxu1  ;;  %v979_v16 = vadd.f32 %v978_v5, %v762_v58  ;;  %v985_v26 = vmax.f32 %v976_v2, 0.0 }
 0x3dc   : > { %v939_v17 = vadd.f32 %v938_v6, %v762_v58  ;;  %v984_v27 = vmax.f32 %v936_v15, 0.0 }
 0x3dd   : > { %v989_v32 = vmax.f32 %v979_v16, 0.0 }
 0x3de   : > { %v988_v33 = vmax.f32 %v939_v17, 0.0 }
 0x3e0   : > { %v1059_v24 = vpop.f32.mrb[12].mxu0  ;;  %v1148_v25 = vpop.f32.mrb[12].mxu1 }
 0x3e1   : > { %v1060_v28 = vadd.f32 %v1059_v24, %v998_v59  ;;  %v1149_v29 = vadd.f32 %v1148_v25, %v1088_v18  ;;  %v1061_v30 = vpop.f32.mrb[13].mxu0  ;;  %v1150_v31 = vpop.f32.mrb[13].mxu1 }
 0x3e2   : > { %v1062_v34 = vadd.f32 %v1061_v30, %v998_v59  ;;  %v1151_v35 = vadd.f32 %v1150_v31, %v1088_v18  ;;  %v1063_v36 = vpop.f32.mrb[14].mxu0  ;;  %v1152_v37 = vpop.f32.mrb[14].mxu1 }
 0x3e3   : > { %v1068_v38 = vadd.f32 %v1060_v28, %v982_v20  ;;  %v1157_v39 = vadd.f32 %v1149_v29, %v984_v27  ;;  %v1064_v40 = vadd.f32 %v1063_v36, %v1003_v0  ;;  %v1153_v41 = vadd.f32 %v1152_v37, %v1093_v19  ;;  %v1065_v42 = vpop.f32.mrb[15].mxu0  ;;  %v1154_v43 = vpop.f32.mrb[15].mxu1 }
 0x3e4   : > { %v1069_v44 = vadd.f32 %v1062_v34, %v983_v21  ;;  %v1158_v45 = vadd.f32 %v1151_v35, %v985_v26  ;;  %v1066_v46 = vadd.f32 %v1065_v42, %v1003_v0  ;;  %v1155_v47 = vadd.f32 %v1154_v43, %v1093_v19 }
 0x3e5   : > { %v1072_v48 = vmax.f32 %v1068_v38, 0.0  ;;  %v1161_v49 = vmax.f32 %v1157_v39, 0.0  ;;  %v1070_v50 = vadd.f32 %v1064_v40, %v986_v22  ;;  %v1159_v51 = vadd.f32 %v1153_v41, %v988_v33 }
 0x3e6   : > { %v1073_v52 = vmax.f32 %v1069_v44, 0.0  ;;  %v1162_v53 = vmax.f32 %v1158_v45, 0.0  ;;  %v1071_v54 = vadd.f32 %v1066_v46, %v987_v23  ;;  %v1160_v14 = vadd.f32 %v1155_v47, %v989_v32 }
 0x3e7   : > { %1076 = vst [vmem:[%s274_s16] sm:$0xff] %v1072_v48  ;;  %1281 = vst [vmem:[%s274_s16 + $0x20] sm:$0xff] %v1161_v49  ;;  %v1074_v4 = vmax.f32 %v1070_v50, 0.0  ;;  %v1163_v3 = vmax.f32 %v1159_v51, 0.0 }
 0x3e8   : > { %1077 = vst [vmem:[%s274_s16 + $0x8] sm:$0xff] %v1073_v52  ;;  %1282 = vst [vmem:[%s274_s16 + $0x28] sm:$0xff] %v1162_v53  ;;  %v1075_v7 = vmax.f32 %v1071_v54, 0.0  ;;  %v1164_v8 = vmax.f32 %v1160_v14, 0.0 }
 0x3e9   : > { %1078 = vst [vmem:[%s274_s16 + $0x10] sm:$0xff] %v1074_v4  ;;  %1283 = vst [vmem:[%s274_s16 + $0x30] sm:$0xff] %v1163_v3 }
 0x3ea   : > { %1079 = vst [vmem:[%s274_s16 + $0x18] sm:$0xff] %v1075_v7  ;;  %1284 = vst [vmem:[%s274_s16 + $0x38] sm:$0xff] %v1164_v8 }
 0x3eb   : > { %1469 = shalt.err (!%p1466_p3)
}
 0x3ec   : > { %s1470_s8 = scalar_lea.hbm %s1825_s28, 1024  ;;  %s1474_s14 = scalar_lea.hbm %s1879_s7, 2048 }
 0x3ed   : > { %p1471_p4 = scmp.ne.s32.totalorder %s1825_s28, %s1470_s8  ;;  %p1475_p9 = scmp.lt.u32.totalorder %s1825_s28, %s1879_s7 }
 0x3ee   : > { %p1476_p10 = scmp.lt.u32.totalorder %s1474_s14, %s1470_s8  ;;  %p1478_p12 = scmp.lt.u32.totalorder %s1470_s8, %s1825_s28 }
 0x3ef   : > { %p1472_p7 = pnand %p1471_p4, %p1607_p5 }
 0x3f0   : > { %p1477_p11 = por %p1476_p10, %p1475_p9 }
 0x3f1   : > { %p1473_p8 = pneg %p1472_p7 }
 0x3f2   : > { %p1479_p13 = por %p1478_p12, %p1477_p11 }
 0x3f4   : > { %p1480_p0 = pnand %p1479_p13, %p1473_p8 }
 0x3f6   : > { %1483 = shalt.err (!%p1480_p0)
}
 0x3f7   : > { %s1527_s18 = smov 256   ;;  %s1528_s19 = smov 16  }
 0x3f8   : > { %1319 = dma.vmem_to_hbm [thread:$0]  (%p1607_p5), %s1827_s17, 1024, %s1825_s28, %s1831_s21, %s1527_s18, %s1527_s18, %s1528_s19  }
 0x3f9 PF: > { %p1325_p1 = scmp.ge.s32.totalorder %s1518_s27, 2  ;;  %s1200_s20 = sand.u32 1, %s1506_s24  }
 0x3fa   : > { %s1201_s22 = scalar_lea.sflag [#allocation4], %s1200_s20 }
 0x3fb   : > { %p1322_p2 = pnand %p1325_p1, %p1611_p6 }
 0x3fd   : > { %1501 = dma.done.wait (!%p1322_p2), %s1201_s22, 1024  }
 0x3fe   : > { %1503 = vsyncadd (!%p1322_p2), %s1201_s22, 4294966272  ;;  %p17_p3 = scmp.ge.s32.totalorder %s1594_s30, 4   ;;  %s1882_s24 = smov %s1510_s25 }
 0x3ff   : > { %s1883_s25 = smov %s1514_s26  ;;  %s1884_s26 = smov %s1605_s10 }
 0x400   : > { %s1885_s27 = smov %s1594_s30  ;;  %19 = sbr.rel (!%p17_p3) target bundleno = 3 (0x3), region = 85 }
 0x407   :  { %1206 = vsyncpa [#allocation4], 1 }
 0x408   :  { %1208 = vsyncpa [#allocation4 + $0x1], 1 }

</bundles_post_ra>
